<compile_context>
chip_gen: v5e
topology: v5e:2x2
jax: 0.10.0
libtpu: 0.0.40
codegen_flags: <defaults>
</compile_context>

<pallas_src>
import numpy as np
import jax
import jax.numpy as jnp
from jax.experimental import pallas as pl
from jax.experimental.pallas import tpu as pltpu

BN_EPS = 1e-5
F32 = jnp.float32
BF16 = jnp.bfloat16


def _round_up(v, m):
    return ((v + m - 1) // m) * m


def _pad2(arr, rows, cols, dtype):
    arr = jnp.asarray(arr, dtype)
    out = jnp.zeros((rows, cols), dtype)
    return out.at[: arr.shape[0], : arr.shape[1]].set(arr)


# ----------------------------------------------------------------------------
# Single fused Pallas kernel: entire forward pass, all operands resident in VMEM
#   x_ref    : (n_pad, 128)    bf16   padded node features
#   a_ref    : (n_pad, n_pad)  bf16   A + (1+eps)*I, zero rows/cols for padding
#   pool_ref : (g_pad, n_pad)  bf16   one-hot graph membership (global_add_pool)
#   pkt_ref  : (g_pad, 128)    bf16   padded pocket features
#   wsq_ref  : (13, 128, 128)  bf16   packed weight stack (see wrapper for order)
#   bias_ref : (16, 128)       f32    packed biases / folded-BN scale & shift
#   o_ref    : (g_pad, 128)    f32    lane-dense padded output
# ----------------------------------------------------------------------------
def fused_forward_kernel(x_ref, a_ref, pool_ref, pkt_ref, wsq_ref, bias_ref, o_ref):
    relu = lambda v: jnp.maximum(v, 0.0)
    W = lambda k: wsq_ref[k]                  # (128, 128) bf16, static index
    B = lambda i: bias_ref[i:i + 1, :]        # (1, 128) f32, static slice

    def mm(act_f32, w_bf16):
        # MXU matmul: bf16 x bf16 -> f32 accumulate; epilogue stays f32.
        return jnp.dot(act_f32.astype(BF16), w_bf16, preferred_element_type=F32)

    # ---- node_embedding : Linear -> ReLU -> Linear --------------------------
    h = relu(jnp.dot(x_ref[...], W(0), preferred_element_type=F32) + B(0))
    h = mm(h, W(1)) + B(1)

    # ---- GIN layer: bn(relu(nn(A_hat @ h))), BN folded into scale/shift -----
    def gin_layer(h, wa, wb, ba, bb, scale, shift):
        agg = jnp.dot(a_ref[...], h.astype(BF16), preferred_element_type=F32)
        z = relu(mm(agg, wa) + ba)            # Linear -> ReLU inside nn*
        z = relu(mm(z, wb) + bb)              # Linear, then F.relu after GINConv
        return z * scale + shift              # BatchNorm1d (eval), pre-folded

    h = gin_layer(h, W(2), W(3), B(2), B(3), B(4), B(5))
    h = gin_layer(h, W(4), W(5), B(6), B(7), B(8), B(9))

    # ---- global_add_pool: mol = P @ h ---------------------------------------
    mol = jnp.dot(pool_ref[...], h.astype(BF16), preferred_element_type=F32)

    # ---- pocket_embedding (Dropout = identity in eval) ----------------------
    pe = relu(jnp.dot(pkt_ref[...], W(6), preferred_element_type=F32) + B(10))
    pe = relu(mm(pe, W(7)) + B(11))
    pe = mm(pe, W(8)) + B(12)

    # ---- predictor: in-VMEM concat -> single K=256 matmul (fills 256-wide MXU)
    c_in = jnp.concatenate([mol, pe], axis=1).astype(BF16)     # (g_pad, 256)
    wqa = jnp.concatenate([W(9), W(10)], axis=0)               # (256, 128)
    c = relu(jnp.dot(c_in, wqa, preferred_element_type=F32) + B(13))
    c = relu(mm(c, W(11)) + B(14))
    o_ref[...] = mm(c, W(12)) + B(15)         # lane-dense (g_pad, 128) f32 store


# ----------------------------------------------------------------------------
# Wrapper: pack weights/biases, fold BN, size VMEM limit, launch the kernel
# ----------------------------------------------------------------------------
def gin_drug_target_forward(params, x, a_hat_pad, pool_pad, pocket):
    p = params
    n, f = x.shape
    g, pf = pocket.shape
    h_dim = p["W0b"].shape[1]
    h2 = p["Wqb"].shape[1]
    out_dim = p["Wqc"].shape[1]
    n_pad = a_hat_pad.shape[0]
    g_pad = pool_pad.shape[0]

    # Packed-weight path assumes the module defaults (128-wide hidden size).
    assert h_dim == 128 and f <= 128 and pf <= 128 and h2 <= 128 and out_dim <= 128
    assert n_pad % 128 == 0 and g_pad % 8 == 0 and n <= n_pad and g <= g_pad

    # Fold BatchNorm (eval / running stats) into scale & shift (host side, f32).
    s1 = p["g1"] * jax.lax.rsqrt(p["rv1"] + BN_EPS)
    t1 = p["be1"] - p["rm1"] * s1
    s2 = p["g2"] * jax.lax.rsqrt(p["rv2"] + BN_EPS)
    t2 = p["be2"] - p["rm2"] * s2

    # Padded bf16 activations.
    x_pad = _pad2(x, n_pad, 128, BF16)
    pkt_pad = _pad2(pocket, g_pad, 128, BF16)

    # Packed weight stack: one (13,128,128) bf16 operand -> one DMA.
    pw = lambda w: _pad2(w, 128, 128, BF16)
    wsq = jnp.stack([
        pw(p["W0a"]), pw(p["W0b"]),                  # 0,1  node_embedding
        pw(p["W1a"]), pw(p["W1b"]),                  # 2,3  nn1
        pw(p["W2a"]), pw(p["W2b"]),                  # 4,5  nn2
        pw(p["Wpa"]), pw(p["Wpb"]), pw(p["Wpc"]),    # 6-8  pocket_embedding
        pw(p["Wqa"][:h_dim]), pw(p["Wqa"][h_dim:]),  # 9,10 predictor L1 (re-fused in kernel)
        pw(p["Wqb"]), pw(p["Wqc"]),                  # 11,12 predictor L2, L3
    ])

    # Packed bias / BN stack: one (16,128) f32 operand -> one DMA.
    pb = lambda b: _pad2(b, 1, 128, F32)
    bias = jnp.concatenate([
        pb(p["b0a"]), pb(p["b0b"]),
        pb(p["b1a"]), pb(p["b1b"]), pb(s1), pb(t1),
        pb(p["b2a"]), pb(p["b2b"]), pb(s2), pb(t2),
        pb(p["bpa"]), pb(p["bpb"]), pb(p["bpc"]),
        pb(p["bqa"]), pb(p["bqb"]), pb(p["bqc"]),
    ], axis=0)

    operands = (x_pad, a_hat_pad, pool_pad, pkt_pad, wsq, bias)

    # VMEM limit sized to the actual footprint (operands + f32 temporaries),
    # capped below physical VMEM (v7x-safe fallback of 64 MiB).
    operand_bytes = sum(int(np.prod(o.shape)) * o.dtype.itemsize for o in operands)
    out_bytes = g_pad * 128 * 4
    temp_bytes = 6 * n_pad * h_dim * 4           # h / agg / z f32 live ranges + slack
    footprint = operand_bytes + out_bytes + temp_bytes
    try:
        phys = int(pltpu.get_tpu_info().vmem_capacity_bytes)
    except Exception:
        phys = 64 * 1024 * 1024
    vmem_limit = int(min(phys - (4 << 20), max(32 << 20, 2 * footprint + (4 << 20))))

    out_padded = pl.pallas_call(
        fused_forward_kernel,
        out_shape=jax.ShapeDtypeStruct((g_pad, 128), F32),
        in_specs=[pl.BlockSpec(memory_space=pltpu.MemorySpace.VMEM)] * len(operands),
        out_specs=pl.BlockSpec(memory_space=pltpu.MemorySpace.VMEM),
        compiler_params=pltpu.CompilerParams(vmem_limit_bytes=vmem_limit),
    )(*operands)
    return out_padded[:g, :out_dim]


gin_drug_target_forward_jit = jax.jit(gin_drug_target_forward)


# ----------------------------------------------------------------------------
# Graph -> dense operators, built DIRECTLY as padded bf16 (no f32 round-trip)
# ----------------------------------------------------------------------------
def build_graph_operators(edge_index, batch_vec, num_nodes, num_graphs,
                          n_pad, g_pad, eps=0.0):
    src, dst = edge_index
    a_hat = jnp.zeros((n_pad, n_pad), BF16)
    a_hat = a_hat.at[dst, src].add(1.0)                         # sum over in-neighbors
    diag = jnp.arange(num_nodes)
    a_hat = a_hat.at[diag, diag].add(1.0 + eps)                 # GINConv self term, eps=0
    # Padded node slots get batch id -1 -> never match any graph row (stay zero).
    batch_pad = jnp.full((n_pad,), -1, jnp.int32).at[:num_nodes].set(batch_vec)
    pool = (batch_pad[None, :] == jnp.arange(g_pad)[:, None]).astype(BF16)
    return a_hat, pool


# ----------------------------------------------------------------------------
# Pure-JAX reference (same math & same bf16-input matmul semantics, no Pallas,
# no padding) for correctness checking.
# ----------------------------------------------------------------------------
def reference_forward(params, x, edge_index, batch_vec, num_graphs, pocket):
    p = params
    relu = lambda v: jnp.maximum(v, 0.0)
    n = x.shape[0]
    src, dst = edge_index
    a_hat = jnp.zeros((n, n), F32).at[dst, src].add(1.0) + jnp.eye(n, dtype=F32)
    pool = (batch_vec[None, :] == jnp.arange(num_graphs)[:, None]).astype(F32)

    def mm(a, b):
        return jnp.dot(a.astype(BF16), b.astype(BF16), preferred_element_type=F32)

    h = relu(mm(x, p["W0a"]) + p["b0a"])
    h = mm(h, p["W0b"]) + p["b0b"]
    for (wa, ba, wb, bb, gma, be, rm, rv) in (
        (p["W1a"], p["b1a"], p["W1b"], p["b1b"], p["g1"], p["be1"], p["rm1"], p["rv1"]),
        (p["W2a"], p["b2a"], p["W2b"], p["b2b"], p["g2"], p["be2"], p["rm2"], p["rv2"]),
    ):
        agg = mm(a_hat, h)
        z = relu(mm(relu(mm(agg, wa) + ba), wb) + bb)
        h = (z - rm) * jax.lax.rsqrt(rv + BN_EPS) * gma + be
    mol = mm(pool, h)
    pe = relu(mm(pocket, p["Wpa"]) + p["bpa"])
    pe = relu(mm(pe, p["Wpb"]) + p["bpb"])
    pe = mm(pe, p["Wpc"]) + p["bpc"]
    c = jnp.concatenate([mol, pe], axis=1)
    c = relu(mm(c, p["Wqa"]) + p["bqa"])
    c = relu(mm(c, p["Wqb"]) + p["bqb"])
    return mm(c, p["Wqc"]) + p["bqc"]


# ----------------------------------------------------------------------------
# Deterministic parameter init (shapes follow the PyTorch __init__, stored f32)
# ----------------------------------------------------------------------------
def init_params(key, node_feat_dim=9, pocket_feat_dim=25, hidden_dim=128, output_dim=1):
    H, H2 = hidden_dim, hidden_dim // 2
    ks = iter(jax.random.split(key, 64))

    def w(shape):
        return (0.1 * jax.random.normal(next(ks), shape)).astype(F32)

    def b(dim):  # biases / BN params kept 2-D (1, dim) for TPU-friendly layout
        return (0.1 * jax.random.normal(next(ks), (1, dim))).astype(F32)

    return {
        # node_embedding
        "W0a": w((node_feat_dim, H)), "b0a": b(H), "W0b": w((H, H)), "b0b": b(H),
        # conv1 (nn1) + bn1
        "W1a": w((H, H)), "b1a": b(H), "W1b": w((H, H)), "b1b": b(H),
        "g1": b(H) + 1.0, "be1": b(H), "rm1": b(H), "rv1": jnp.abs(b(H)) + 1.0,
        # conv2 (nn2) + bn2
        "W2a": w((H, H)), "b2a": b(H), "W2b": w((H, H)), "b2b": b(H),
        "g2": b(H) + 1.0, "be2": b(H), "rm2": b(H), "rv2": jnp.abs(b(H)) + 1.0,
        # pocket_embedding
        "Wpa": w((pocket_feat_dim, H)), "bpa": b(H),
        "Wpb": w((H, H)), "bpb": b(H),
        "Wpc": w((H, H)), "bpc": b(H),
        # predictor
        "Wqa": w((2 * H, H)), "bqa": b(H),
        "Wqb": w((H, H2)), "bqb": b(H2),
        "Wqc": w((H2, output_dim)), "bqc": b(output_dim),
    }


if __name__ == "__main__":
    NODE_FEAT, POCKET_FEAT, HIDDEN, OUT = 9, 25, 128, 1
    NUM_GRAPHS = 2
    NUM_NODES = 12  # graph 0: nodes 0..4 (ring of 5), graph 1: nodes 5..11 (ring of 7)

    # deterministic edge_index (bidirectional rings), PyG convention (2, E)
    und = [(0, 1), (1, 2), (2, 3), (3, 4), (4, 0)] + \
          [(5 + i, 5 + (i + 1) % 7) for i in range(7)]
    src = np.array([u for (u, v) in und] + [v for (u, v) in und], dtype=np.int32)
    dst = np.array([v for (u, v) in und] + [u for (u, v) in und], dtype=np.int32)
    edge_index = (jnp.asarray(src), jnp.asarray(dst))
    batch_vec = jnp.asarray(np.array([0] * 5 + [1] * 7, dtype=np.int32))

    key = jax.random.PRNGKey(0)
    k_par, k_x, k_t = jax.random.split(key, 3)
    params = init_params(k_par, NODE_FEAT, POCKET_FEAT, HIDDEN, OUT)

    x = jax.random.normal(k_x, (NUM_NODES, NODE_FEAT), dtype=F32)               # batch.x
    target_features = jax.random.normal(k_t, (NUM_GRAPHS, POCKET_FEAT), F32)    # batch.target_features

    n_pad = _round_up(NUM_NODES, 128)
    g_pad = _round_up(NUM_GRAPHS, 8)
    a_hat_pad, pool_pad = build_graph_operators(
        edge_index, batch_vec, NUM_NODES, NUM_GRAPHS, n_pad, g_pad)

    out = gin_drug_target_forward_jit(params, x, a_hat_pad, pool_pad, target_features)
    out = jax.block_until_ready(out)
    assert out.shape == (NUM_GRAPHS, OUT), out.shape

    ref = jax.block_until_ready(
        reference_forward(params, x, edge_index, batch_vec, NUM_GRAPHS, target_features))
    np.testing.assert_allclose(np.asarray(out), np.asarray(ref), rtol=5e-3, atol=5e-3)

    print("KERNEL_OK")
</pallas_src>

<mosaic_0001>
module attributes {stable_mosaic.version = 11 : i64} {
  func.func @fused_forward_kernel(%arg0: memref<128x128xbf16, #tpu.memory_space<vmem>>, %arg1: memref<128x128xbf16, #tpu.memory_space<vmem>>, %arg2: memref<8x128xbf16, #tpu.memory_space<vmem>>, %arg3: memref<8x128xbf16, #tpu.memory_space<vmem>>, %arg4: memref<13x128x128xbf16, #tpu.memory_space<vmem>>, %arg5: memref<16x128xf32, #tpu.memory_space<vmem>>, %arg6: memref<8x128xf32, #tpu.memory_space<vmem>>) attributes {dimension_semantics = [], scalar_prefetch = 0 : i64, scratch_operands = 0 : i64, tpu.core_type = #tpu.core_type<tc>} {
    %c0 = arith.constant 0 : index
    %c0_0 = arith.constant 0 : index
    %0 = vector.load %arg0[%c0, %c0_0] : memref<128x128xbf16, #tpu.memory_space<vmem>>, vector<128x128xbf16>
    %c0_1 = arith.constant 0 : index
    %c0_2 = arith.constant 0 : index
    %c0_3 = arith.constant 0 : index
    %1 = vector.load %arg4[%c0_1, %c0_2, %c0_3] : memref<13x128x128xbf16, #tpu.memory_space<vmem>>, vector<1x128x128xbf16>
    %2 = vector.shape_cast %1 : vector<1x128x128xbf16> to vector<128x128xbf16>
    %cst = arith.constant dense<0.000000e+00> : vector<128x128xf32>
    %3 = tpu.matmul %0, %2, %cst {dimension_numbers = #tpu.dot_dimension_numbers<[1], [0], [0], [1], [0, 0, 1, 1], [], []>} : vector<128x128xbf16>, vector<128x128xbf16>, vector<128x128xf32> -> vector<128x128xf32>
    %c0_4 = arith.constant 0 : index
    %c0_5 = arith.constant 0 : index
    %4 = vector.load %arg5[%c0_4, %c0_5] : memref<16x128xf32, #tpu.memory_space<vmem>>, vector<1x128xf32>
    %5 = vector.broadcast %4 : vector<1x128xf32> to vector<128x128xf32>
    %6 = arith.addf %3, %5 : vector<128x128xf32>
    %cst_6 = arith.constant 0.000000e+00 : f32
    %7 = vector.broadcast %cst_6 : f32 to vector<128x128xf32>
    %8 = arith.maximumf %6, %7 : vector<128x128xf32>
    %c1 = arith.constant 1 : index
    %c0_7 = arith.constant 0 : index
    %c0_8 = arith.constant 0 : index
    %9 = vector.load %arg4[%c1, %c0_7, %c0_8] : memref<13x128x128xbf16, #tpu.memory_space<vmem>>, vector<1x128x128xbf16>
    %10 = vector.shape_cast %9 : vector<1x128x128xbf16> to vector<128x128xbf16>
    %11 = arith.truncf %8 : vector<128x128xf32> to vector<128x128xbf16>
    %cst_9 = arith.constant dense<0.000000e+00> : vector<128x128xf32>
    %12 = tpu.matmul %11, %10, %cst_9 {dimension_numbers = #tpu.dot_dimension_numbers<[1], [0], [0], [1], [0, 0, 1, 1], [], []>} : vector<128x128xbf16>, vector<128x128xbf16>, vector<128x128xf32> -> vector<128x128xf32>
    %c1_10 = arith.constant 1 : index
    %c0_11 = arith.constant 0 : index
    %13 = vector.load %arg5[%c1_10, %c0_11] : memref<16x128xf32, #tpu.memory_space<vmem>>, vector<1x128xf32>
    %14 = vector.broadcast %13 : vector<1x128xf32> to vector<128x128xf32>
    %15 = arith.addf %12, %14 : vector<128x128xf32>
    %c2 = arith.constant 2 : index
    %c0_12 = arith.constant 0 : index
    %c0_13 = arith.constant 0 : index
    %16 = vector.load %arg4[%c2, %c0_12, %c0_13] : memref<13x128x128xbf16, #tpu.memory_space<vmem>>, vector<1x128x128xbf16>
    %17 = vector.shape_cast %16 : vector<1x128x128xbf16> to vector<128x128xbf16>
    %c3 = arith.constant 3 : index
    %c0_14 = arith.constant 0 : index
    %c0_15 = arith.constant 0 : index
    %18 = vector.load %arg4[%c3, %c0_14, %c0_15] : memref<13x128x128xbf16, #tpu.memory_space<vmem>>, vector<1x128x128xbf16>
    %19 = vector.shape_cast %18 : vector<1x128x128xbf16> to vector<128x128xbf16>
    %c2_16 = arith.constant 2 : index
    %c0_17 = arith.constant 0 : index
    %20 = vector.load %arg5[%c2_16, %c0_17] : memref<16x128xf32, #tpu.memory_space<vmem>>, vector<1x128xf32>
    %c3_18 = arith.constant 3 : index
    %c0_19 = arith.constant 0 : index
    %21 = vector.load %arg5[%c3_18, %c0_19] : memref<16x128xf32, #tpu.memory_space<vmem>>, vector<1x128xf32>
    %c4 = arith.constant 4 : index
    %c0_20 = arith.constant 0 : index
    %22 = vector.load %arg5[%c4, %c0_20] : memref<16x128xf32, #tpu.memory_space<vmem>>, vector<1x128xf32>
    %c5 = arith.constant 5 : index
    %c0_21 = arith.constant 0 : index
    %23 = vector.load %arg5[%c5, %c0_21] : memref<16x128xf32, #tpu.memory_space<vmem>>, vector<1x128xf32>
    %c0_22 = arith.constant 0 : index
    %c0_23 = arith.constant 0 : index
    %24 = vector.load %arg1[%c0_22, %c0_23] : memref<128x128xbf16, #tpu.memory_space<vmem>>, vector<128x128xbf16>
    %25 = arith.truncf %15 : vector<128x128xf32> to vector<128x128xbf16>
    %cst_24 = arith.constant dense<0.000000e+00> : vector<128x128xf32>
    %26 = tpu.matmul %24, %25, %cst_24 {dimension_numbers = #tpu.dot_dimension_numbers<[1], [0], [0], [1], [0, 0, 1, 1], [], []>} : vector<128x128xbf16>, vector<128x128xbf16>, vector<128x128xf32> -> vector<128x128xf32>
    %27 = arith.truncf %26 : vector<128x128xf32> to vector<128x128xbf16>
    %cst_25 = arith.constant dense<0.000000e+00> : vector<128x128xf32>
    %28 = tpu.matmul %27, %17, %cst_25 {dimension_numbers = #tpu.dot_dimension_numbers<[1], [0], [0], [1], [0, 0, 1, 1], [], []>} : vector<128x128xbf16>, vector<128x128xbf16>, vector<128x128xf32> -> vector<128x128xf32>
    %29 = vector.broadcast %20 : vector<1x128xf32> to vector<128x128xf32>
    %30 = arith.addf %28, %29 : vector<128x128xf32>
    %cst_26 = arith.constant 0.000000e+00 : f32
    %31 = vector.broadcast %cst_26 : f32 to vector<128x128xf32>
    %32 = arith.maximumf %30, %31 : vector<128x128xf32>
    %33 = arith.truncf %32 : vector<128x128xf32> to vector<128x128xbf16>
    %cst_27 = arith.constant dense<0.000000e+00> : vector<128x128xf32>
    %34 = tpu.matmul %33, %19, %cst_27 {dimension_numbers = #tpu.dot_dimension_numbers<[1], [0], [0], [1], [0, 0, 1, 1], [], []>} : vector<128x128xbf16>, vector<128x128xbf16>, vector<128x128xf32> -> vector<128x128xf32>
    %35 = vector.broadcast %21 : vector<1x128xf32> to vector<128x128xf32>
    %36 = arith.addf %34, %35 : vector<128x128xf32>
    %cst_28 = arith.constant 0.000000e+00 : f32
    %37 = vector.broadcast %cst_28 : f32 to vector<128x128xf32>
    %38 = arith.maximumf %36, %37 : vector<128x128xf32>
    %39 = vector.broadcast %22 : vector<1x128xf32> to vector<128x128xf32>
    %40 = arith.mulf %38, %39 : vector<128x128xf32>
    %41 = vector.broadcast %23 : vector<1x128xf32> to vector<128x128xf32>
    %42 = arith.addf %40, %41 : vector<128x128xf32>
    %c4_29 = arith.constant 4 : index
    %c0_30 = arith.constant 0 : index
    %c0_31 = arith.constant 0 : index
    %43 = vector.load %arg4[%c4_29, %c0_30, %c0_31] : memref<13x128x128xbf16, #tpu.memory_space<vmem>>, vector<1x128x128xbf16>
    %44 = vector.shape_cast %43 : vector<1x128x128xbf16> to vector<128x128xbf16>
    %c5_32 = arith.constant 5 : index
    %c0_33 = arith.constant 0 : index
    %c0_34 = arith.constant 0 : index
    %45 = vector.load %arg4[%c5_32, %c0_33, %c0_34] : memref<13x128x128xbf16, #tpu.memory_space<vmem>>, vector<1x128x128xbf16>
    %46 = vector.shape_cast %45 : vector<1x128x128xbf16> to vector<128x128xbf16>
    %c6 = arith.constant 6 : index
    %c0_35 = arith.constant 0 : index
    %47 = vector.load %arg5[%c6, %c0_35] : memref<16x128xf32, #tpu.memory_space<vmem>>, vector<1x128xf32>
    %c7 = arith.constant 7 : index
    %c0_36 = arith.constant 0 : index
    %48 = vector.load %arg5[%c7, %c0_36] : memref<16x128xf32, #tpu.memory_space<vmem>>, vector<1x128xf32>
    %c8 = arith.constant 8 : index
    %c0_37 = arith.constant 0 : index
    %49 = vector.load %arg5[%c8, %c0_37] : memref<16x128xf32, #tpu.memory_space<vmem>>, vector<1x128xf32>
    %c9 = arith.constant 9 : index
    %c0_38 = arith.constant 0 : index
    %50 = vector.load %arg5[%c9, %c0_38] : memref<16x128xf32, #tpu.memory_space<vmem>>, vector<1x128xf32>
    %c0_39 = arith.constant 0 : index
    %c0_40 = arith.constant 0 : index
    %51 = vector.load %arg1[%c0_39, %c0_40] : memref<128x128xbf16, #tpu.memory_space<vmem>>, vector<128x128xbf16>
    %52 = arith.truncf %42 : vector<128x128xf32> to vector<128x128xbf16>
    %cst_41 = arith.constant dense<0.000000e+00> : vector<128x128xf32>
    %53 = tpu.matmul %51, %52, %cst_41 {dimension_numbers = #tpu.dot_dimension_numbers<[1], [0], [0], [1], [0, 0, 1, 1], [], []>} : vector<128x128xbf16>, vector<128x128xbf16>, vector<128x128xf32> -> vector<128x128xf32>
    %54 = arith.truncf %53 : vector<128x128xf32> to vector<128x128xbf16>
    %cst_42 = arith.constant dense<0.000000e+00> : vector<128x128xf32>
    %55 = tpu.matmul %54, %44, %cst_42 {dimension_numbers = #tpu.dot_dimension_numbers<[1], [0], [0], [1], [0, 0, 1, 1], [], []>} : vector<128x128xbf16>, vector<128x128xbf16>, vector<128x128xf32> -> vector<128x128xf32>
    %56 = vector.broadcast %47 : vector<1x128xf32> to vector<128x128xf32>
    %57 = arith.addf %55, %56 : vector<128x128xf32>
    %cst_43 = arith.constant 0.000000e+00 : f32
    %58 = vector.broadcast %cst_43 : f32 to vector<128x128xf32>
    %59 = arith.maximumf %57, %58 : vector<128x128xf32>
    %60 = arith.truncf %59 : vector<128x128xf32> to vector<128x128xbf16>
    %cst_44 = arith.constant dense<0.000000e+00> : vector<128x128xf32>
    %61 = tpu.matmul %60, %46, %cst_44 {dimension_numbers = #tpu.dot_dimension_numbers<[1], [0], [0], [1], [0, 0, 1, 1], [], []>} : vector<128x128xbf16>, vector<128x128xbf16>, vector<128x128xf32> -> vector<128x128xf32>
    %62 = vector.broadcast %48 : vector<1x128xf32> to vector<128x128xf32>
    %63 = arith.addf %61, %62 : vector<128x128xf32>
    %cst_45 = arith.constant 0.000000e+00 : f32
    %64 = vector.broadcast %cst_45 : f32 to vector<128x128xf32>
    %65 = arith.maximumf %63, %64 : vector<128x128xf32>
    %66 = vector.broadcast %49 : vector<1x128xf32> to vector<128x128xf32>
    %67 = arith.mulf %65, %66 : vector<128x128xf32>
    %68 = vector.broadcast %50 : vector<1x128xf32> to vector<128x128xf32>
    %69 = arith.addf %67, %68 : vector<128x128xf32>
    %c0_46 = arith.constant 0 : index
    %c0_47 = arith.constant 0 : index
    %70 = vector.load %arg2[%c0_46, %c0_47] : memref<8x128xbf16, #tpu.memory_space<vmem>>, vector<8x128xbf16>
    %71 = arith.truncf %69 : vector<128x128xf32> to vector<128x128xbf16>
    %cst_48 = arith.constant dense<0.000000e+00> : vector<8x128xf32>
    %72 = tpu.matmul %70, %71, %cst_48 {dimension_numbers = #tpu.dot_dimension_numbers<[1], [0], [0], [1], [0, 0, 1, 1], [], []>} : vector<8x128xbf16>, vector<128x128xbf16>, vector<8x128xf32> -> vector<8x128xf32>
    %c0_49 = arith.constant 0 : index
    %c0_50 = arith.constant 0 : index
    %73 = vector.load %arg3[%c0_49, %c0_50] : memref<8x128xbf16, #tpu.memory_space<vmem>>, vector<8x128xbf16>
    %c6_51 = arith.constant 6 : index
    %c0_52 = arith.constant 0 : index
    %c0_53 = arith.constant 0 : index
    %74 = vector.load %arg4[%c6_51, %c0_52, %c0_53] : memref<13x128x128xbf16, #tpu.memory_space<vmem>>, vector<1x128x128xbf16>
    %75 = vector.shape_cast %74 : vector<1x128x128xbf16> to vector<128x128xbf16>
    %cst_54 = arith.constant dense<0.000000e+00> : vector<8x128xf32>
    %76 = tpu.matmul %73, %75, %cst_54 {dimension_numbers = #tpu.dot_dimension_numbers<[1], [0], [0], [1], [0, 0, 1, 1], [], []>} : vector<8x128xbf16>, vector<128x128xbf16>, vector<8x128xf32> -> vector<8x128xf32>
    %c10 = arith.constant 10 : index
    %c0_55 = arith.constant 0 : index
    %77 = vector.load %arg5[%c10, %c0_55] : memref<16x128xf32, #tpu.memory_space<vmem>>, vector<1x128xf32>
    %78 = vector.broadcast %77 : vector<1x128xf32> to vector<8x128xf32>
    %79 = arith.addf %76, %78 : vector<8x128xf32>
    %cst_56 = arith.constant 0.000000e+00 : f32
    %80 = vector.broadcast %cst_56 : f32 to vector<8x128xf32>
    %81 = arith.maximumf %79, %80 : vector<8x128xf32>
    %c7_57 = arith.constant 7 : index
    %c0_58 = arith.constant 0 : index
    %c0_59 = arith.constant 0 : index
    %82 = vector.load %arg4[%c7_57, %c0_58, %c0_59] : memref<13x128x128xbf16, #tpu.memory_space<vmem>>, vector<1x128x128xbf16>
    %83 = vector.shape_cast %82 : vector<1x128x128xbf16> to vector<128x128xbf16>
    %84 = arith.truncf %81 : vector<8x128xf32> to vector<8x128xbf16>
    %cst_60 = arith.constant dense<0.000000e+00> : vector<8x128xf32>
    %85 = tpu.matmul %84, %83, %cst_60 {dimension_numbers = #tpu.dot_dimension_numbers<[1], [0], [0], [1], [0, 0, 1, 1], [], []>} : vector<8x128xbf16>, vector<128x128xbf16>, vector<8x128xf32> -> vector<8x128xf32>
    %c11 = arith.constant 11 : index
    %c0_61 = arith.constant 0 : index
    %86 = vector.load %arg5[%c11, %c0_61] : memref<16x128xf32, #tpu.memory_space<vmem>>, vector<1x128xf32>
    %87 = vector.broadcast %86 : vector<1x128xf32> to vector<8x128xf32>
    %88 = arith.addf %85, %87 : vector<8x128xf32>
    %cst_62 = arith.constant 0.000000e+00 : f32
    %89 = vector.broadcast %cst_62 : f32 to vector<8x128xf32>
    %90 = arith.maximumf %88, %89 : vector<8x128xf32>
    %c8_63 = arith.constant 8 : index
    %c0_64 = arith.constant 0 : index
    %c0_65 = arith.constant 0 : index
    %91 = vector.load %arg4[%c8_63, %c0_64, %c0_65] : memref<13x128x128xbf16, #tpu.memory_space<vmem>>, vector<1x128x128xbf16>
    %92 = vector.shape_cast %91 : vector<1x128x128xbf16> to vector<128x128xbf16>
    %93 = arith.truncf %90 : vector<8x128xf32> to vector<8x128xbf16>
    %cst_66 = arith.constant dense<0.000000e+00> : vector<8x128xf32>
    %94 = tpu.matmul %93, %92, %cst_66 {dimension_numbers = #tpu.dot_dimension_numbers<[1], [0], [0], [1], [0, 0, 1, 1], [], []>} : vector<8x128xbf16>, vector<128x128xbf16>, vector<8x128xf32> -> vector<8x128xf32>
    %c12 = arith.constant 12 : index
    %c0_67 = arith.constant 0 : index
    %95 = vector.load %arg5[%c12, %c0_67] : memref<16x128xf32, #tpu.memory_space<vmem>>, vector<1x128xf32>
    %96 = vector.broadcast %95 : vector<1x128xf32> to vector<8x128xf32>
    %97 = arith.addf %94, %96 : vector<8x128xf32>
    %98 = tpu.concatenate %72, %97 in 1 : vector<8x128xf32>, vector<8x128xf32> -> vector<8x256xf32>
    %99 = arith.truncf %98 : vector<8x256xf32> to vector<8x256xbf16>
    %c9_68 = arith.constant 9 : index
    %c0_69 = arith.constant 0 : index
    %c0_70 = arith.constant 0 : index
    %100 = vector.load %arg4[%c9_68, %c0_69, %c0_70] : memref<13x128x128xbf16, #tpu.memory_space<vmem>>, vector<1x128x128xbf16>
    %101 = vector.shape_cast %100 : vector<1x128x128xbf16> to vector<128x128xbf16>
    %c10_71 = arith.constant 10 : index
    %c0_72 = arith.constant 0 : index
    %c0_73 = arith.constant 0 : index
    %102 = vector.load %arg4[%c10_71, %c0_72, %c0_73] : memref<13x128x128xbf16, #tpu.memory_space<vmem>>, vector<1x128x128xbf16>
    %103 = vector.shape_cast %102 : vector<1x128x128xbf16> to vector<128x128xbf16>
    %104 = tpu.concatenate %101, %103 in 0 : vector<128x128xbf16>, vector<128x128xbf16> -> vector<256x128xbf16>
    %cst_74 = arith.constant dense<0.000000e+00> : vector<8x128xf32>
    %105 = tpu.matmul %99, %104, %cst_74 {dimension_numbers = #tpu.dot_dimension_numbers<[1], [0], [0], [1], [0, 0, 1, 1], [], []>} : vector<8x256xbf16>, vector<256x128xbf16>, vector<8x128xf32> -> vector<8x128xf32>
    %c13 = arith.constant 13 : index
    %c0_75 = arith.constant 0 : index
    %106 = vector.load %arg5[%c13, %c0_75] : memref<16x128xf32, #tpu.memory_space<vmem>>, vector<1x128xf32>
    %107 = vector.broadcast %106 : vector<1x128xf32> to vector<8x128xf32>
    %108 = arith.addf %105, %107 : vector<8x128xf32>
    %cst_76 = arith.constant 0.000000e+00 : f32
    %109 = vector.broadcast %cst_76 : f32 to vector<8x128xf32>
    %110 = arith.maximumf %108, %109 : vector<8x128xf32>
    %c11_77 = arith.constant 11 : index
    %c0_78 = arith.constant 0 : index
    %c0_79 = arith.constant 0 : index
    %111 = vector.load %arg4[%c11_77, %c0_78, %c0_79] : memref<13x128x128xbf16, #tpu.memory_space<vmem>>, vector<1x128x128xbf16>
    %112 = vector.shape_cast %111 : vector<1x128x128xbf16> to vector<128x128xbf16>
    %113 = arith.truncf %110 : vector<8x128xf32> to vector<8x128xbf16>
    %cst_80 = arith.constant dense<0.000000e+00> : vector<8x128xf32>
    %114 = tpu.matmul %113, %112, %cst_80 {dimension_numbers = #tpu.dot_dimension_numbers<[1], [0], [0], [1], [0, 0, 1, 1], [], []>} : vector<8x128xbf16>, vector<128x128xbf16>, vector<8x128xf32> -> vector<8x128xf32>
    %c14 = arith.constant 14 : index
    %c0_81 = arith.constant 0 : index
    %115 = vector.load %arg5[%c14, %c0_81] : memref<16x128xf32, #tpu.memory_space<vmem>>, vector<1x128xf32>
    %116 = vector.broadcast %115 : vector<1x128xf32> to vector<8x128xf32>
    %117 = arith.addf %114, %116 : vector<8x128xf32>
    %cst_82 = arith.constant 0.000000e+00 : f32
    %118 = vector.broadcast %cst_82 : f32 to vector<8x128xf32>
    %119 = arith.maximumf %117, %118 : vector<8x128xf32>
    %c12_83 = arith.constant 12 : index
    %c0_84 = arith.constant 0 : index
    %c0_85 = arith.constant 0 : index
    %120 = vector.load %arg4[%c12_83, %c0_84, %c0_85] : memref<13x128x128xbf16, #tpu.memory_space<vmem>>, vector<1x128x128xbf16>
    %121 = vector.shape_cast %120 : vector<1x128x128xbf16> to vector<128x128xbf16>
    %122 = arith.truncf %119 : vector<8x128xf32> to vector<8x128xbf16>
    %cst_86 = arith.constant dense<0.000000e+00> : vector<8x128xf32>
    %123 = tpu.matmul %122, %121, %cst_86 {dimension_numbers = #tpu.dot_dimension_numbers<[1], [0], [0], [1], [0, 0, 1, 1], [], []>} : vector<8x128xbf16>, vector<128x128xbf16>, vector<8x128xf32> -> vector<8x128xf32>
    %c15 = arith.constant 15 : index
    %c0_87 = arith.constant 0 : index
    %124 = vector.load %arg5[%c15, %c0_87] : memref<16x128xf32, #tpu.memory_space<vmem>>, vector<1x128xf32>
    %125 = vector.broadcast %124 : vector<1x128xf32> to vector<8x128xf32>
    %126 = arith.addf %123, %125 : vector<8x128xf32>
    %c0_88 = arith.constant 0 : index
    %c0_89 = arith.constant 0 : index
    %127 = vector.load %arg6[%c0_88, %c0_89] : memref<8x128xf32, #tpu.memory_space<vmem>>, vector<8x128xf32>
    tpu.vector_store %arg6[%c0_88, %c0_89], %126 {strides = array<i32>} : memref<8x128xf32, #tpu.memory_space<vmem>>, vector<8x128xf32>,
    return
  }
}

</mosaic_0001>

<bundles_post_ra>
// kernel: gin_drug_target_forward.1
= control target key start
LH: loop header
LB: loop body
LE: loop exit
PB: predicated region body
PF: predicated region fallthrough
CT: control target
= control target key end

     0   :  { %s3223_s4 = inlined_call_operand.vmem [shape: bf16[13,128,128], index: 4, kind: input, shape index: {}]   ;;  %s3224_s5 = inlined_call_operand.vmem [shape: f32[16,128], index: 5, kind: input, shape index: {}]   ;;  %s3225_s0 = inlined_call_operand.vmem [shape: bf16[128,128], index: 0, kind: input, shape index: {}]   ;;  %s3226_s1 = inlined_call_operand.vmem [shape: bf16[128,128], index: 1, kind: input, shape index: {}]   ;;  %s3227_s3 = inlined_call_operand.vmem [shape: bf16[8,128], index: 3, kind: input, shape index: {}]   ;;  %s3228_s2 = inlined_call_operand.vmem [shape: bf16[8,128], index: 2, kind: input, shape index: {}]   ;;  %s3229_s6 = inlined_call_operand.vmem [shape: f32[8,128], index: 6, kind: output, shape index: {}]  }
   0x1   :  { %v2435_v0 = vld [vmem:[%s3223_s4 + $0x38] sm:$0xff]  ;;  %v2434_v1 = vld [vmem:[%s3223_s4 + $0x30] sm:$0xff]  ;;  %v2433_v2 = vld [vmem:[%s3223_s4 + $0x28] sm:$0xff] }
   0x2   :  { %153 = vmatpush.bf16.msra.mxu0 %v2435_v0  ;;  %v2432_v3 = vld [vmem:[%s3223_s4 + $0x20] sm:$0xff]  ;;  %v2431_v4 = vld [vmem:[%s3223_s4 + $0x18] sm:$0xff]  ;;  %v2430_v5 = vld [vmem:[%s3223_s4 + $0x10] sm:$0xff] }
   0x3   :  { %v2429_v6 = vld [vmem:[%s3223_s4 + $0x8] sm:$0xff]  ;;  %v2428_v7 = vld [vmem:[%s3223_s4] sm:$0xff]  ;;  %v2422_v10 = vld [vmem:[%s3225_s0 + $0x10] sm:$0xff] }
   0x4   :  { %v2420_v8 = vld [vmem:[%s3225_s0] sm:$0xff]  ;;  %v2421_v9 = vld [vmem:[%s3225_s0 + $0x8] sm:$0xff]  ;;  %v2423_v11 = vld [vmem:[%s3225_s0 + $0x18] sm:$0xff] }
   0x5   :  { %v2424_v12 = vld [vmem:[%s3225_s0 + $0x20] sm:$0xff]  ;;  %v2443_v13 = vld [vmem:[%s3223_s4 + $0x78] sm:$0xff]  ;;  %v2425_v14 = vld [vmem:[%s3225_s0 + $0x28] sm:$0xff] }
   0x6   :  { %154 = vmatpush.bf16.msra.mxu0 %v2434_v1  ;;  %293 = vmatpush.bf16.msra.mxu1 %v2443_v13  ;;  %v2442_v15 = vld [vmem:[%s3223_s4 + $0x70] sm:$0xff]  ;;  %v2441_v16 = vld [vmem:[%s3223_s4 + $0x68] sm:$0xff]  ;;  %v2440_v17 = vld [vmem:[%s3223_s4 + $0x60] sm:$0xff] }
   0x7   :  { %v2439_v18 = vld [vmem:[%s3223_s4 + $0x58] sm:$0xff]  ;;  %v2426_v19 = vld [vmem:[%s3225_s0 + $0x30] sm:$0xff]  ;;  %v2437_v21 = vld [vmem:[%s3223_s4 + $0x48] sm:$0xff] }
   0x8   :  { %v2438_v20 = vld [vmem:[%s3223_s4 + $0x50] sm:$0xff]  ;;  %v2436_v22 = vld [vmem:[%s3223_s4 + $0x40] sm:$0xff]  ;;  %v2427_v23 = vld [vmem:[%s3225_s0 + $0x38] sm:$0xff] }
   0x9   :  { %v2540_v25 = vld [vmem:[%s3224_s5] ss:$0 sm:$0xff] }
   0xa   :  { %155 = vmatpush.bf16.msra.mxu0 %v2433_v2  ;;  %294 = vmatpush.bf16.msra.mxu1 %v2442_v15 }
   0xe   :  { %156 = vmatpush.bf16.msra.mxu0 %v2432_v3  ;;  %295 = vmatpush.bf16.msra.mxu1 %v2441_v16 }
  0x12   :  { %157 = vmatpush.bf16.msra.mxu0 %v2431_v4  ;;  %296 = vmatpush.bf16.msra.mxu1 %v2440_v17 }
  0x16   :  { %158 = vmatpush.bf16.msra.mxu0 %v2430_v5  ;;  %297 = vmatpush.bf16.msra.mxu1 %v2439_v18 }
  0x1a   :  { %159 = vmatpush.bf16.msra.mxu0 %v2429_v6  ;;  %298 = vmatpush.bf16.msra.mxu1 %v2438_v20 }
  0x1e   :  { %160 = vmatpush.bf16.msra.mxu0 %v2428_v7  ;;  %299 = vmatpush.bf16.msra.mxu1 %v2437_v21 }
  0x21   :  { %161 = vmatmul.bf16.vlgmr.msra.gmra.mxu0 %v2420_v8 }
  0x22   :  { %300 = vmatpush.bf16.msra.mxu1 %v2436_v22 }
  0x31   :  { %166 = vmatmul.bf16.gmra.mxu0 %v2421_v9 }
  0x41   :  { %171 = vmatmul.bf16.gmra.mxu0 %v2422_v10 }
  0x51   :  { %176 = vmatmul.bf16.gmra.mxu0 %v2423_v11 }
  0x61   :  { %181 = vmatmul.bf16.gmra.mxu0 %v2424_v12 }
  0x71   :  { %186 = vmatmul.bf16.gmra.mxu0 %v2425_v14 }
  0x81   :  { %191 = vmatmul.bf16.gmra.mxu0 %v2426_v19 }
  0x91   :  { %196 = vmatmul.bf16.gmra.mxu0 %v2427_v23 }
  0x9e   :  { %v162_v24 = vpop.f32.mrf.mxu0 }
  0x9f   :  { %v163_v26 = vadd.f32 %v2540_v25, %v162_v24 }
  0xa1   :  { %v202_v29 = vmax.f32 %v163_v26, 0.0 }
  0xa6   :  { %v164_v27 = vpop.f32.mrf.mxu0 }
  0xa7   :  { %v165_v28 = vadd.f32 %v2540_v25, %v164_v27 }
  0xa9   :  { %v203_v30 = vmax.f32 %v165_v28, 0.0 }
  0xab   :  { %v235_v31 = vpack.c.bf16 %v203_v30, %v202_v29 }
  0xad   :  { %301 = vmatmul.bf16.vlgmr.msra.gmra.mxu1 %v235_v31 }
  0xae   :  { %v167_v32 = vpop.f32.mrf.mxu0 }
  0xaf   :  { %v168_v33 = vadd.f32 %v2540_v25, %v167_v32 }
  0xb1   :  { %v204_v36 = vmax.f32 %v168_v33, 0.0 }
  0xb6   :  { %v169_v34 = vpop.f32.mrf.mxu0 }
  0xb7   :  { %v170_v35 = vadd.f32 %v2540_v25, %v169_v34 }
  0xb9   :  { %v205_v37 = vmax.f32 %v170_v35, 0.0 }
  0xbb   :  { %v236_v38 = vpack.c.bf16 %v205_v37, %v204_v36 }
  0xbd   :  { %306 = vmatmul.bf16.gmra.mxu1 %v236_v38 }
  0xbe   :  { %v172_v39 = vpop.f32.mrf.mxu0 }
  0xbf   :  { %v173_v40 = vadd.f32 %v2540_v25, %v172_v39 }
  0xc1   :  { %v206_v43 = vmax.f32 %v173_v40, 0.0 }
  0xc6   :  { %v174_v41 = vpop.f32.mrf.mxu0 }
  0xc7   :  { %v175_v42 = vadd.f32 %v2540_v25, %v174_v41 }
  0xc9   :  { %v207_v44 = vmax.f32 %v175_v42, 0.0 }
  0xcb   :  { %v237_v45 = vpack.c.bf16 %v207_v44, %v206_v43 }
  0xcd   :  { %311 = vmatmul.bf16.gmra.mxu1 %v237_v45 }
  0xce   :  { %v177_v46 = vpop.f32.mrf.mxu0 }
  0xcf   :  { %v178_v47 = vadd.f32 %v2540_v25, %v177_v46 }
  0xd1   :  { %v208_v50 = vmax.f32 %v178_v47, 0.0 }
  0xd6   :  { %v179_v48 = vpop.f32.mrf.mxu0 }
  0xd7   :  { %v180_v49 = vadd.f32 %v2540_v25, %v179_v48 }
  0xd9   :  { %v209_v51 = vmax.f32 %v180_v49, 0.0 }
  0xdb   :  { %v238_v52 = vpack.c.bf16 %v209_v51, %v208_v50 }
  0xdd   :  { %316 = vmatmul.bf16.gmra.mxu1 %v238_v52 }
  0xde   :  { %v182_v53 = vpop.f32.mrf.mxu0 }
  0xdf   :  { %v183_v54 = vadd.f32 %v2540_v25, %v182_v53 }
  0xe1   :  { %v210_v57 = vmax.f32 %v183_v54, 0.0 }
  0xe6   :  { %v184_v55 = vpop.f32.mrf.mxu0 }
  0xe7   :  { %v185_v56 = vadd.f32 %v2540_v25, %v184_v55 }
  0xe9   :  { %v211_v58 = vmax.f32 %v185_v56, 0.0 }
  0xeb   :  { %v239_v59 = vpack.c.bf16 %v211_v58, %v210_v57  ;;  %v2672_v58 = vld [vmem:[%s3226_s1] sm:$0xff] }
  0xed   :  { %321 = vmatmul.bf16.gmra.mxu1 %v239_v59  ;;  %v2678_v59 = vld [vmem:[%s3226_s1 + $0x8] sm:$0xff] }
  0xee   :  { %v187_v60 = vpop.f32.mrf.mxu0 }
  0xef   :  { %v188_v61 = vadd.f32 %v2540_v25, %v187_v60  ;;  %v2684_v60 = vld [vmem:[%s3226_s1 + $0x10] sm:$0xff] }
  0xf1   :  { %v212_v0 = vmax.f32 %v188_v61, 0.0  ;;  %v2690_v61 = vld [vmem:[%s3226_s1 + $0x18] sm:$0xff] }
  0xf6   :  { %v189_v62 = vpop.f32.mrf.mxu0 }
  0xf7   :  { %v190_v63 = vadd.f32 %v2540_v25, %v189_v62  ;;  %v2696_v62 = vld [vmem:[%s3226_s1 + $0x20] sm:$0xff] }
  0xf9   :  { %v213_v1 = vmax.f32 %v190_v63, 0.0  ;;  %v2451_v63 = vld [vmem:[%s3223_s4 + $0xb8] sm:$0xff] }
  0xfa   :  { %558 = vmatpush.bf16.msra.mxu3 %v2451_v63 }
  0xfb   :  { %v240_v2 = vpack.c.bf16 %v213_v1, %v212_v0  ;;  %v2705_v0 = vld [vmem:[%s3226_s1 + $0x28] sm:$0xff]  ;;  %v2450_v1 = vld [vmem:[%s3223_s4 + $0xb0] sm:$0xff] }
  0xfd   :  { %326 = vmatmul.bf16.gmra.mxu1 %v240_v2  ;;  %v2449_v2 = vld [vmem:[%s3223_s4 + $0xa8] sm:$0xff] }
  0xfe   :  { %v192_v3 = vpop.f32.mrf.mxu0  ;;  %559 = vmatpush.bf16.msra.mxu3 %v2450_v1 }
  0xff   :  { %v193_v4 = vadd.f32 %v2540_v25, %v192_v3  ;;  %v2448_v3 = vld [vmem:[%s3223_s4 + $0xa0] sm:$0xff] }
 0x101   :  { %v214_v7 = vmax.f32 %v193_v4, 0.0  ;;  %v2447_v4 = vld [vmem:[%s3223_s4 + $0x98] sm:$0xff] }
 0x102   :  { %560 = vmatpush.bf16.msra.mxu3 %v2449_v2 }
 0x106   :  { %v194_v5 = vpop.f32.mrf.mxu0  ;;  %561 = vmatpush.bf16.msra.mxu3 %v2448_v3 }
 0x107   :  { %v195_v6 = vadd.f32 %v2540_v25, %v194_v5  ;;  %v2723_v5 = vld [vmem:[%s3226_s1 + $0x30] sm:$0xff] }
 0x109   :  { %v215_v8 = vmax.f32 %v195_v6, 0.0  ;;  %v2446_v6 = vld [vmem:[%s3223_s4 + $0x90] sm:$0xff] }
 0x10a   :  { %562 = vmatpush.bf16.msra.mxu3 %v2447_v4 }
 0x10b   :  { %v241_v9 = vpack.c.bf16 %v215_v8, %v214_v7  ;;  %v2445_v7 = vld [vmem:[%s3223_s4 + $0x88] sm:$0xff]  ;;  %v2444_v8 = vld [vmem:[%s3223_s4 + $0x80] sm:$0xff] }
 0x10d   :  { %331 = vmatmul.bf16.gmra.mxu1 %v241_v9  ;;  %v2738_v9 = vld [vmem:[%s3226_s1 + $0x38] sm:$0xff] }
 0x10e   :  { %v197_v10 = vpop.f32.mrf.mxu0  ;;  %563 = vmatpush.bf16.msra.mxu3 %v2446_v6 }
 0x10f   :  { %v198_v11 = vadd.f32 %v2540_v25, %v197_v10 }
 0x111   :  { %v216_v14 = vmax.f32 %v198_v11, 0.0 }
 0x112   :  { %564 = vmatpush.bf16.msra.mxu3 %v2445_v7 }
 0x116   :  { %v199_v12 = vpop.f32.mrf.mxu0  ;;  %565 = vmatpush.bf16.msra.mxu3 %v2444_v8 }
 0x117   :  { %v200_v13 = vadd.f32 %v2540_v25, %v199_v12  ;;  %v2541_v25 = vld [vmem:[%s3224_s5 + $0x1] ss:$0 sm:$0xff] }
 0x119   :  { %v217_v15 = vmax.f32 %v200_v13, 0.0 }
 0x11b   :  { %v242_v16 = vpack.c.bf16 %v217_v15, %v216_v14 }
 0x11d   :  { %336 = vmatmul.bf16.gmra.mxu1 %v242_v16 }
 0x12a   :  { %v302_v17 = vpop.f32.mrf.mxu1 }
 0x12b   :  { %v303_v56 = vadd.f32 %v2541_v25, %v302_v17 }
 0x132   :  { %v304_v18 = vpop.f32.mrf.mxu1 }
 0x133   :  { %v305_v54 = vadd.f32 %v2541_v25, %v304_v18 }
 0x135   :  { %v396_v57 = vpack.c.bf16 %v305_v54, %v303_v56 }
 0x13a   :  { %v307_v19 = vpop.f32.mrf.mxu1 }
 0x13b   :  { %v308_v53 = vadd.f32 %v2541_v25, %v307_v19 }
 0x142   :  { %v309_v20 = vpop.f32.mrf.mxu1 }
 0x143   :  { %v310_v51 = vadd.f32 %v2541_v25, %v309_v20 }
 0x145   :  { %v397_v55 = vpack.c.bf16 %v310_v51, %v308_v53 }
 0x14a   :  { %v312_v21 = vpop.f32.mrf.mxu1 }
 0x14b   :  { %v313_v50 = vadd.f32 %v2541_v25, %v312_v21 }
 0x152   :  { %v314_v22 = vpop.f32.mrf.mxu1 }
 0x153   :  { %v315_v48 = vadd.f32 %v2541_v25, %v314_v22 }
 0x155   :  { %v398_v52 = vpack.c.bf16 %v315_v48, %v313_v50 }
 0x15a   :  { %v317_v23 = vpop.f32.mrf.mxu1 }
 0x15b   :  { %v318_v47 = vadd.f32 %v2541_v25, %v317_v23 }
 0x162   :  { %v319_v24 = vpop.f32.mrf.mxu1 }
 0x163   :  { %v320_v45 = vadd.f32 %v2541_v25, %v319_v24 }
 0x165   :  { %v399_v49 = vpack.c.bf16 %v320_v45, %v318_v47 }
 0x16a   :  { %v322_v26 = vpop.f32.mrf.mxu1 }
 0x16b   :  { %v323_v44 = vadd.f32 %v2541_v25, %v322_v26 }
 0x172   :  { %v324_v27 = vpop.f32.mrf.mxu1 }
 0x173   :  { %v325_v42 = vadd.f32 %v2541_v25, %v324_v27 }
 0x175   :  { %v400_v46 = vpack.c.bf16 %v325_v42, %v323_v44 }
 0x17a   :  { %v327_v28 = vpop.f32.mrf.mxu1 }
 0x17b   :  { %v328_v41 = vadd.f32 %v2541_v25, %v327_v28 }
 0x182   :  { %v329_v29 = vpop.f32.mrf.mxu1 }
 0x183   :  { %v330_v39 = vadd.f32 %v2541_v25, %v329_v29  ;;  %v2459_v29 = vld [vmem:[%s3223_s4 + $0xf8] sm:$0xff] }
 0x184   :  { %680 = vmatpush.bf16.msrb.mxu0 %v2459_v29 }
 0x185   :  { %v401_v43 = vpack.c.bf16 %v330_v39, %v328_v41 }
 0x18a   :  { %v332_v30 = vpop.f32.mrf.mxu1 }
 0x18b   :  { %v333_v38 = vadd.f32 %v2541_v25, %v332_v30  ;;  %v2458_v30 = vld [vmem:[%s3223_s4 + $0xf0] sm:$0xff] }
 0x18c   :  { %681 = vmatpush.bf16.msrb.mxu0 %v2458_v30 }
 0x192   :  { %v334_v31 = vpop.f32.mrf.mxu1 }
 0x193   :  { %v335_v36 = vadd.f32 %v2541_v25, %v334_v31 }
 0x195   :  { %v402_v40 = vpack.c.bf16 %v335_v36, %v333_v38  ;;  %v2453_v38 = vld [vmem:[%s3223_s4 + $0xc8] sm:$0xff] }
 0x19a   :  { %v337_v32 = vpop.f32.mrf.mxu1 }
 0x19b   :  { %v338_v34 = vadd.f32 %v2541_v25, %v337_v32  ;;  %v2457_v32 = vld [vmem:[%s3223_s4 + $0xe8] sm:$0xff] }
 0x19c   :  { %682 = vmatpush.bf16.msrb.mxu0 %v2457_v32 }
 0x1a2   :  { %v339_v33 = vpop.f32.mrf.mxu1 }
 0x1a3   :  { %v340_v35 = vadd.f32 %v2541_v25, %v339_v33  ;;  %v2456_v25 = vld [vmem:[%s3223_s4 + $0xe0] sm:$0xff] }
 0x1a4   :  { %683 = vmatpush.bf16.msrb.mxu0 %v2456_v25 }
 0x1a5   :  { %v403_v37 = vpack.c.bf16 %v340_v35, %v338_v34  ;;  %v2455_v35 = vld [vmem:[%s3223_s4 + $0xd8] sm:$0xff] }
 0x1a7   :  { %452 = vmatpush.bf16.msra.mxu2 %v403_v37  ;;  %v2454_v37 = vld [vmem:[%s3223_s4 + $0xd0] sm:$0xff] }
 0x1a8   :  { %684 = vmatpush.bf16.msrb.mxu0 %v2455_v35 }
 0x1ab   :  { %453 = vmatpush.bf16.msra.mxu2 %v402_v40  ;;  %v2452_v40 = vld [vmem:[%s3223_s4 + $0xc0] sm:$0xff] }
 0x1ac   :  { %685 = vmatpush.bf16.msrb.mxu0 %v2454_v37 }
 0x1af   :  { %454 = vmatpush.bf16.msra.mxu2 %v401_v43  ;;  %v2542_v43 = vld [vmem:[%s3224_s5 + $0x2] ss:$0 sm:$0xff] }
 0x1b0   :  { %686 = vmatpush.bf16.msrb.mxu0 %v2453_v38 }
 0x1b3   :  { %455 = vmatpush.bf16.msra.mxu2 %v400_v46 }
 0x1b4   :  { %687 = vmatpush.bf16.msrb.mxu0 %v2452_v40 }
 0x1b7   :  { %456 = vmatpush.bf16.msra.mxu2 %v399_v49 }
 0x1bb   :  { %457 = vmatpush.bf16.msra.mxu2 %v398_v52 }
 0x1bf   :  { %458 = vmatpush.bf16.msra.mxu2 %v397_v55 }
 0x1c3   :  { %459 = vmatpush.bf16.msra.mxu2 %v396_v57 }
 0x1c6   :  { %460 = vmatmul.bf16.vlgmr.msra.gmra.mxu2 %v2672_v58 }
 0x1d6   :  { %465 = vmatmul.bf16.gmra.mxu2 %v2678_v59 }
 0x1e6   :  { %470 = vmatmul.bf16.gmra.mxu2 %v2684_v60 }
 0x1f6   :  { %475 = vmatmul.bf16.gmra.mxu2 %v2690_v61 }
 0x206   :  { %480 = vmatmul.bf16.gmra.mxu2 %v2696_v62 }
 0x216   :  { %485 = vmatmul.bf16.gmra.mxu2 %v2705_v0 }
 0x226   :  { %490 = vmatmul.bf16.gmra.mxu2 %v2723_v5 }
 0x236   :  { %495 = vmatmul.bf16.gmra.mxu2 %v2738_v9 }
 0x249   :  { %v461_v10 = vpop.f32.mrf.mxu2 }
 0x251   :  { %v463_v11 = vpop.f32.mrf.mxu2 }
 0x252   :  { %v501_v12 = vpack.c.bf16 %v463_v11, %v461_v10 }
 0x254   :  { %566 = vmatmul.bf16.vlgmr.msra.gmra.mxu3 %v501_v12 }
 0x259   :  { %v466_v13 = vpop.f32.mrf.mxu2 }
 0x261   :  { %v468_v14 = vpop.f32.mrf.mxu2 }
 0x262   :  { %v502_v15 = vpack.c.bf16 %v468_v14, %v466_v13 }
 0x264   :  { %571 = vmatmul.bf16.gmra.mxu3 %v502_v15 }
 0x269   :  { %v471_v16 = vpop.f32.mrf.mxu2 }
 0x271   :  { %v473_v17 = vpop.f32.mrf.mxu2 }
 0x272   :  { %v503_v18 = vpack.c.bf16 %v473_v17, %v471_v16 }
 0x274   :  { %576 = vmatmul.bf16.gmra.mxu3 %v503_v18 }
 0x279   :  { %v476_v19 = vpop.f32.mrf.mxu2 }
 0x281   :  { %v478_v20 = vpop.f32.mrf.mxu2 }
 0x282   :  { %v504_v21 = vpack.c.bf16 %v478_v20, %v476_v19 }
 0x284   :  { %581 = vmatmul.bf16.gmra.mxu3 %v504_v21 }
 0x289   :  { %v481_v22 = vpop.f32.mrf.mxu2 }
 0x291   :  { %v483_v23 = vpop.f32.mrf.mxu2 }
 0x292   :  { %v505_v24 = vpack.c.bf16 %v483_v23, %v481_v22 }
 0x294   :  { %586 = vmatmul.bf16.gmra.mxu3 %v505_v24 }
 0x299   :  { %v486_v26 = vpop.f32.mrf.mxu2 }
 0x2a1   :  { %v488_v27 = vpop.f32.mrf.mxu2 }
 0x2a2   :  { %v506_v28 = vpack.c.bf16 %v488_v27, %v486_v26 }
 0x2a4   :  { %591 = vmatmul.bf16.gmra.mxu3 %v506_v28 }
 0x2a9   :  { %v491_v31 = vpop.f32.mrf.mxu2 }
 0x2b1   :  { %v493_v33 = vpop.f32.mrf.mxu2 }
 0x2b2   :  { %v507_v34 = vpack.c.bf16 %v493_v33, %v491_v31 }
 0x2b4   :  { %596 = vmatmul.bf16.gmra.mxu3 %v507_v34 }
 0x2b9   :  { %v496_v36 = vpop.f32.mrf.mxu2 }
 0x2c1   :  { %v498_v39 = vpop.f32.mrf.mxu2 }
 0x2c2   :  { %v508_v41 = vpack.c.bf16 %v498_v39, %v496_v36 }
 0x2c4   :  { %601 = vmatmul.bf16.gmra.mxu3 %v508_v41 }
 0x2d7   :  { %v567_v42 = vpop.f32.mrf.mxu3 }
 0x2d8   :  { %v568_v44 = vadd.f32 %v2542_v43, %v567_v42 }
 0x2da   :  { %v607_v47 = vmax.f32 %v568_v44, 0.0  ;;  %v2771_v44 = vld [vmem:[%s3224_s5 + $0x3] ss:$0 sm:$0xff] }
 0x2df   :  { %v569_v45 = vpop.f32.mrf.mxu3 }
 0x2e0   :  { %v570_v46 = vadd.f32 %v2542_v43, %v569_v45 }
 0x2e2   :  { %v608_v48 = vmax.f32 %v570_v46, 0.0 }
 0x2e4   :  { %v623_v49 = vpack.c.bf16 %v608_v48, %v607_v47  ;;  %v2777_v48 = vld [vmem:[%s3224_s5 + $0x4] ss:$0 sm:$0xff] }
 0x2e6   :  { %688 = vmatmul.bf16.vlgmr.msrb.gmra.mxu0 %v623_v49 }
 0x2e7   :  { %v572_v50 = vpop.f32.mrf.mxu3 }
 0x2e8   :  { %v573_v51 = vadd.f32 %v2542_v43, %v572_v50 }
 0x2ea   :  { %v609_v54 = vmax.f32 %v573_v51, 0.0 }
 0x2ef   :  { %v574_v52 = vpop.f32.mrf.mxu3 }
 0x2f0   :  { %v575_v53 = vadd.f32 %v2542_v43, %v574_v52  ;;  %v2784_v52 = vld [vmem:[%s3224_s5 + $0x5] ss:$0 sm:$0xff] }
 0x2f2   :  { %v610_v55 = vmax.f32 %v575_v53, 0.0 }
 0x2f4   :  { %v624_v56 = vpack.c.bf16 %v610_v55, %v609_v54 }
 0x2f6   :  { %693 = vmatmul.bf16.gmra.mxu0 %v624_v56 }
 0x2f7   :  { %v577_v57 = vpop.f32.mrf.mxu3 }
 0x2f8   :  { %v578_v63 = vadd.f32 %v2542_v43, %v577_v57 }
 0x2fa   :  { %v611_v3 = vmax.f32 %v578_v63, 0.0 }
 0x2ff   :  { %v579_v1 = vpop.f32.mrf.mxu3 }
 0x300   :  { %v580_v2 = vadd.f32 %v2542_v43, %v579_v1 }
 0x302   :  { %v612_v4 = vmax.f32 %v580_v2, 0.0 }
 0x304   :  { %v625_v6 = vpack.c.bf16 %v612_v4, %v611_v3 }
 0x306   :  { %698 = vmatmul.bf16.gmra.mxu0 %v625_v6 }
 0x307   :  { %v582_v7 = vpop.f32.mrf.mxu3 }
 0x308   :  { %v583_v8 = vadd.f32 %v2542_v43, %v582_v7 }
 0x30a   :  { %v613_v12 = vmax.f32 %v583_v8, 0.0 }
 0x30f   :  { %v584_v10 = vpop.f32.mrf.mxu3 }
 0x310   :  { %v585_v11 = vadd.f32 %v2542_v43, %v584_v10 }
 0x312   :  { %v614_v13 = vmax.f32 %v585_v11, 0.0 }
 0x314   :  { %v626_v14 = vpack.c.bf16 %v614_v13, %v613_v12 }
 0x316   :  { %703 = vmatmul.bf16.gmra.mxu0 %v626_v14 }
 0x317   :  { %v587_v15 = vpop.f32.mrf.mxu3 }
 0x318   :  { %v588_v16 = vadd.f32 %v2542_v43, %v587_v15 }
 0x31a   :  { %v615_v19 = vmax.f32 %v588_v16, 0.0 }
 0x31f   :  { %v589_v17 = vpop.f32.mrf.mxu3 }
 0x320   :  { %v590_v18 = vadd.f32 %v2542_v43, %v589_v17 }
 0x322   :  { %v616_v20 = vmax.f32 %v590_v18, 0.0 }
 0x324   :  { %v627_v21 = vpack.c.bf16 %v616_v20, %v615_v19 }
 0x326   :  { %708 = vmatmul.bf16.gmra.mxu0 %v627_v21 }
 0x327   :  { %v592_v22 = vpop.f32.mrf.mxu3 }
 0x328   :  { %v593_v23 = vadd.f32 %v2542_v43, %v592_v22 }
 0x32a   :  { %v617_v27 = vmax.f32 %v593_v23, 0.0 }
 0x32f   :  { %v594_v24 = vpop.f32.mrf.mxu3 }
 0x330   :  { %v595_v26 = vadd.f32 %v2542_v43, %v594_v24 }
 0x332   :  { %v618_v28 = vmax.f32 %v595_v26, 0.0 }
 0x334   :  { %v628_v29 = vpack.c.bf16 %v618_v28, %v617_v27 }
 0x336   :  { %713 = vmatmul.bf16.gmra.mxu0 %v628_v29 }
 0x337   :  { %v597_v30 = vpop.f32.mrf.mxu3 }
 0x338   :  { %v598_v31 = vadd.f32 %v2542_v43, %v597_v30 }
 0x33a   :  { %v619_v33 = vmax.f32 %v598_v31, 0.0 }
 0x33f   :  { %v599_v32 = vpop.f32.mrf.mxu3 }
 0x340   :  { %v600_v25 = vadd.f32 %v2542_v43, %v599_v32 }
 0x342   :  { %v620_v34 = vmax.f32 %v600_v25, 0.0 }
 0x344   :  { %v629_v35 = vpack.c.bf16 %v620_v34, %v619_v33 }
 0x346   :  { %718 = vmatmul.bf16.gmra.mxu0 %v629_v35 }
 0x347   :  { %v602_v36 = vpop.f32.mrf.mxu3 }
 0x348   :  { %v603_v37 = vadd.f32 %v2542_v43, %v602_v36 }
 0x34a   :  { %v621_v40 = vmax.f32 %v603_v37, 0.0 }
 0x34f   :  { %v604_v38 = vpop.f32.mrf.mxu3 }
 0x350   :  { %v605_v39 = vadd.f32 %v2542_v43, %v604_v38 }
 0x352   :  { %v622_v41 = vmax.f32 %v605_v39, 0.0 }
 0x354   :  { %v630_v42 = vpack.c.bf16 %v622_v41, %v621_v40 }
 0x356   :  { %723 = vmatmul.bf16.gmra.mxu0 %v630_v42 }
 0x363   :  { %v689_v45 = vpop.f32.mrf.mxu0 }
 0x364   :  { %v690_v46 = vadd.f32 %v2771_v44, %v689_v45 }
 0x366   :  { %v729_v47 = vmax.f32 %v690_v46, 0.0 }
 0x368   :  { %v746_v50 = vmul.f32 %v2777_v48, %v729_v47 }
 0x36a   :  { %v2788_v54 = vadd.f32 %v2784_v52, %v746_v50 }
 0x36b   :  { %v691_v49 = vpop.f32.mrf.mxu0 }
 0x36c   :  { %v692_v43 = vadd.f32 %v2771_v44, %v691_v49 }
 0x36e   :  { %v730_v51 = vmax.f32 %v692_v43, 0.0 }
 0x370   :  { %v747_v53 = vmul.f32 %v2777_v48, %v730_v51 }
 0x372   :  { %v2791_v55 = vadd.f32 %v2784_v52, %v747_v53 }
 0x373   :  { %v694_v56 = vpop.f32.mrf.mxu0 }
 0x374   :  { %v817_v57 = vpack.c.bf16 %v2791_v55, %v2788_v54  ;;  %v695_v63 = vadd.f32 %v2771_v44, %v694_v56 }
 0x376   :  { %v731_v1 = vmax.f32 %v695_v63, 0.0 }
 0x378   :  { %v748_v4 = vmul.f32 %v2777_v48, %v731_v1 }
 0x37a   :  { %v2800_v8 = vadd.f32 %v2784_v52, %v748_v4 }
 0x37b   :  { %v696_v2 = vpop.f32.mrf.mxu0 }
 0x37c   :  { %v697_v3 = vadd.f32 %v2771_v44, %v696_v2 }
 0x37e   :  { %v732_v6 = vmax.f32 %v697_v3, 0.0 }
 0x380   :  { %v749_v7 = vmul.f32 %v2777_v48, %v732_v6 }
 0x382   :  { %v2803_v10 = vadd.f32 %v2784_v52, %v749_v7 }
 0x383   :  { %v699_v11 = vpop.f32.mrf.mxu0 }
 0x384   :  { %v818_v12 = vpack.c.bf16 %v2803_v10, %v2800_v8  ;;  %v700_v13 = vadd.f32 %v2771_v44, %v699_v11 }
 0x386   :  { %v733_v14 = vmax.f32 %v700_v13, 0.0 }
 0x388   :  { %v750_v17 = vmul.f32 %v2777_v48, %v733_v14 }
 0x38a   :  { %v2812_v20 = vadd.f32 %v2784_v52, %v750_v17 }
 0x38b   :  { %v701_v15 = vpop.f32.mrf.mxu0 }
 0x38c   :  { %v702_v16 = vadd.f32 %v2771_v44, %v701_v15 }
 0x38e   :  { %v734_v18 = vmax.f32 %v702_v16, 0.0 }
 0x390   :  { %v751_v19 = vmul.f32 %v2777_v48, %v734_v18 }
 0x392   :  { %v768_v21 = vadd.f32 %v2784_v52, %v751_v19 }
 0x393   :  { %v704_v22 = vpop.f32.mrf.mxu0 }
 0x394   :  { %v819_v23 = vpack.c.bf16 %v768_v21, %v2812_v20  ;;  %v705_v24 = vadd.f32 %v2771_v44, %v704_v22 }
 0x396   :  { %v735_v26 = vmax.f32 %v705_v24, 0.0 }
 0x398   :  { %v752_v29 = vmul.f32 %v2777_v48, %v735_v26 }
 0x39a   :  { %v769_v32 = vadd.f32 %v2784_v52, %v752_v29 }
 0x39b   :  { %v706_v27 = vpop.f32.mrf.mxu0 }
 0x39c   :  { %v707_v28 = vadd.f32 %v2771_v44, %v706_v27 }
 0x39e   :  { %v736_v30 = vmax.f32 %v707_v28, 0.0 }
 0x3a0   :  { %v753_v31 = vmul.f32 %v2777_v48, %v736_v30 }
 0x3a2   :  { %v770_v25 = vadd.f32 %v2784_v52, %v753_v31 }
 0x3a3   :  { %v709_v33 = vpop.f32.mrf.mxu0 }
 0x3a4   :  { %v820_v34 = vpack.c.bf16 %v770_v25, %v769_v32  ;;  %v710_v6 = vadd.f32 %v2771_v44, %v709_v33 }
 0x3a6   :  { %v737_v19 = vmax.f32 %v710_v6, 0.0  ;;  %v2476_v6 = vld [vmem:[%s3223_s4 + $0x140] sm:$0xff] }
 0x3a8   :  { %v754_v26 = vmul.f32 %v2777_v48, %v737_v19 }
 0x3aa   :  { %v771_v30 = vadd.f32 %v2784_v52, %v754_v26 }
 0x3ab   :  { %v711_v35 = vpop.f32.mrf.mxu0 }
 0x3ac   :  { %v712_v1 = vadd.f32 %v2771_v44, %v711_v35 }
 0x3ae   :  { %v738_v15 = vmax.f32 %v712_v1, 0.0  ;;  %v2488_v1 = vld [vmem:[%s3223_s4 + $0x1a0] sm:$0xff] }
 0x3b3   :  { %v714_v36 = vpop.f32.mrf.mxu0 }
 0x3b4   :  { %v715_v51 = vadd.f32 %v2771_v44, %v714_v36 }
 0x3b6   :  { %v739_v7 = vmax.f32 %v715_v51, 0.0  ;;  %v2479_v51 = vld [vmem:[%s3223_s4 + $0x158] sm:$0xff] }
 0x3b8   :  { %v756_v20 = vmul.f32 %v2777_v48, %v739_v7 }
 0x3ba   :  { %v773_v27 = vadd.f32 %v2784_v52, %v756_v20 }
 0x3bb   :  { %v716_v37 = vpop.f32.mrf.mxu0 }
 0x3bc   :  { %v717_v49 = vadd.f32 %v2771_v44, %v716_v37 }
 0x3be   :  { %v740_v2 = vmax.f32 %v717_v49, 0.0 }
 0x3c0   :  { %v757_v16 = vmul.f32 %v2777_v48, %v740_v2  ;;  %v2477_v2 = vld [vmem:[%s3223_s4 + $0x148] sm:$0xff] }
 0x3c2   :  { %v774_v24 = vadd.f32 %v2784_v52, %v757_v16 }
 0x3c3   :  { %v719_v38 = vpop.f32.mrf.mxu0 }
 0x3c4   :  { %v720_v45 = vadd.f32 %v2771_v44, %v719_v38  ;;  %v822_v28 = vpack.c.bf16 %v774_v24, %v773_v27 }
 0x3c6   :  { %v741_v53 = vmax.f32 %v720_v45, 0.0  ;;  %v2481_v45 = vld [vmem:[%s3223_s4 + $0x168] sm:$0xff] }
 0x3c8   :  { %v758_v11 = vmul.f32 %v2777_v48, %v741_v53  ;;  %v2489_v53 = vld [vmem:[%s3223_s4 + $0x1a8] sm:$0xff] }
 0x3ca   :  { %v775_v21 = vadd.f32 %v2784_v52, %v758_v11  ;;  %v2486_v11 = vld [vmem:[%s3223_s4 + $0x190] sm:$0xff] }
 0x3cb   :  { %v721_v39 = vpop.f32.mrf.mxu0 }
 0x3cc   :  { %v722_v42 = vadd.f32 %v2771_v44, %v721_v39 }
 0x3ce   :  { %v742_v43 = vmax.f32 %v722_v42, 0.0 }
 0x3d0   :  { %v759_v3 = vmul.f32 %v2777_v48, %v742_v43 }
 0x3d2   :  { %v776_v18 = vadd.f32 %v2784_v52, %v759_v3  ;;  %v2487_v3 = vld [vmem:[%s3223_s4 + $0x198] sm:$0xff] }
 0x3d3   :  { %v724_v40 = vpop.f32.mrf.mxu0 }
 0x3d4   :  { %v725_v41 = vadd.f32 %v2771_v44, %v724_v40  ;;  %v823_v22 = vpack.c.bf16 %v776_v18, %v775_v21  ;;  %v2483_v40 = vld [vmem:[%s3223_s4 + $0x178] sm:$0xff] }
 0x3d5   :  { %1053 = vmatpush.bf16.msrb.mxu3 %v2483_v40 }
 0x3d6   :  { %v743_v46 = vmax.f32 %v725_v41, 0.0  ;;  %v2482_v41 = vld [vmem:[%s3223_s4 + $0x170] sm:$0xff] }
 0x3d8   :  { %v760_v56 = vmul.f32 %v2777_v48, %v743_v46  ;;  %v2480_v46 = vld [vmem:[%s3223_s4 + $0x160] sm:$0xff] }
 0x3d9   :  { %1054 = vmatpush.bf16.msrb.mxu3 %v2482_v41  ;;  %v2499_v41 = vld [vmem:[%s3223_s4 + $0x1f8] sm:$0xff] }
 0x3da   :  { %v777_v13 = vadd.f32 %v2784_v52, %v760_v56 }
 0x3db   :  { %v726_v47 = vpop.f32.mrf.mxu0 }
 0x3dc   :  { %v727_v50 = vadd.f32 %v2771_v44, %v726_v47  ;;  %v755_v44 = vmul.f32 %v2777_v48, %v738_v15  ;;  %v2491_v47 = vld [vmem:[%s3223_s4 + $0x1b8] sm:$0xff]  ;;  %v1174_v15 = vld [vmem:[%s3227_s3] sm:$0xf] }
 0x3dd   :  { %1055 = vmatpush.bf16.msrb.mxu3 %v2481_v45  ;;  %v2498_v45 = vld [vmem:[%s3223_s4 + $0x1f0] sm:$0xff] }
 0x3de   :  { %v744_v63 = vmax.f32 %v727_v50, 0.0  ;;  %v772_v29 = vadd.f32 %v2784_v52, %v755_v44  ;;  %v2490_v50 = vld [vmem:[%s3223_s4 + $0x1b0] sm:$0xff] }
 0x3e0   :  { %v761_v4 = vmul.f32 %v2777_v48, %v744_v63  ;;  %v821_v31 = vpack.c.bf16 %v772_v29, %v771_v30  ;;  %v2475_v48 = vld [vmem:[%s3223_s4 + $0x138] sm:$0xff]  ;;  %v2478_v63 = vld [vmem:[%s3223_s4 + $0x150] sm:$0xff] }
 0x3e1   :  { %931 = vmatpush.bf16.msrb.mxu2 %v2475_v48  ;;  %1056 = vmatpush.bf16.msrb.mxu3 %v2480_v46 }
 0x3e2   :  { %v778_v14 = vadd.f32 %v2784_v52, %v761_v4  ;;  %v2474_v52 = vld [vmem:[%s3223_s4 + $0x130] sm:$0xff] }
 0x3e4   :  { %v824_v17 = vpack.c.bf16 %v778_v14, %v777_v13  ;;  %v2485_v13 = vld [vmem:[%s3223_s4 + $0x188] sm:$0xff]  ;;  %v2484_v14 = vld [vmem:[%s3223_s4 + $0x180] sm:$0xff] }
 0x3e5   :  { %932 = vmatpush.bf16.msrb.mxu2 %v2474_v52  ;;  %1057 = vmatpush.bf16.msrb.mxu3 %v2479_v51 }
 0x3e6   :  { %825 = vmatpush.bf16.msrb.mxu1 %v824_v17  ;;  %v2938_v17 = vld [vmem:[%s3224_s5 + $0x6] ss:$0 sm:$0xff] }
 0x3e9   :  { %1058 = vmatpush.bf16.msrb.mxu3 %v2478_v63  ;;  %v2495_v63 = vld [vmem:[%s3223_s4 + $0x1d8] sm:$0xff] }
 0x3ea   :  { %826 = vmatpush.bf16.msrb.mxu1 %v823_v22 }
 0x3ed   :  { %1059 = vmatpush.bf16.msrb.mxu3 %v2477_v2  ;;  %v2494_v2 = vld [vmem:[%s3223_s4 + $0x1d0] sm:$0xff] }
 0x3ee   :  { %827 = vmatpush.bf16.msrb.mxu1 %v822_v28 }
 0x3f1   :  { %1060 = vmatpush.bf16.msrb.mxu3 %v2476_v6  ;;  %v2550_v6 = vld [vmem:[%s3224_s5 + $0xa] ss:$0 sm:$0xff] }
 0x3f2   :  { %828 = vmatpush.bf16.msrb.mxu1 %v821_v31 }
 0x3f6   :  { %829 = vmatpush.bf16.msrb.mxu1 %v820_v34 }
 0x3fa   :  { %830 = vmatpush.bf16.msrb.mxu1 %v819_v23 }
 0x3fe   :  { %831 = vmatpush.bf16.msrb.mxu1 %v818_v12 }
 0x402   :  { %832 = vmatpush.bf16.msrb.mxu1 %v817_v57 }
 0x405   :  { %833 = vmatmul.bf16.vlgmr.msrb.gmra.mxu1 %v2672_v58  ;;  %v2473_v58 = vld [vmem:[%s3223_s4 + $0x128] sm:$0xff] }
 0x406   :  { %933 = vmatpush.bf16.msrb.mxu2 %v2473_v58  ;;  %1242 = vmatpush.bf16.msra.mxu1 %v2491_v47  ;;  %v2497_v47 = vld [vmem:[%s3223_s4 + $0x1e8] sm:$0xff] }
 0x40a   :  { %1243 = vmatpush.bf16.msra.mxu1 %v2490_v50 }
 0x40e   :  { %1244 = vmatpush.bf16.msra.mxu1 %v2489_v53 }
 0x412   :  { %1245 = vmatpush.bf16.msra.mxu1 %v2488_v1 }
 0x415   :  { %838 = vmatmul.bf16.gmra.mxu1 %v2678_v59  ;;  %v2472_v59 = vld [vmem:[%s3223_s4 + $0x120] sm:$0xff] }
 0x416   :  { %934 = vmatpush.bf16.msrb.mxu2 %v2472_v59  ;;  %1246 = vmatpush.bf16.msra.mxu1 %v2487_v3 }
 0x41a   :  { %1247 = vmatpush.bf16.msra.mxu1 %v2486_v11 }
 0x41e   :  { %1248 = vmatpush.bf16.msra.mxu1 %v2485_v13 }
 0x422   :  { %1249 = vmatpush.bf16.msra.mxu1 %v2484_v14  ;;  %v2492_v14 = vld [vmem:[%s3223_s4 + $0x1c0] sm:$0xff] }
 0x425   :  { %843 = vmatmul.bf16.gmra.mxu1 %v2684_v60  ;;  %v2471_v60 = vld [vmem:[%s3223_s4 + $0x118] sm:$0xff] }
 0x426   :  { %935 = vmatpush.bf16.msrb.mxu2 %v2471_v60 }
 0x435   :  { %848 = vmatmul.bf16.gmra.mxu1 %v2690_v61  ;;  %v2470_v61 = vld [vmem:[%s3223_s4 + $0x110] sm:$0xff] }
 0x436   :  { %936 = vmatpush.bf16.msrb.mxu2 %v2470_v61 }
 0x445   :  { %853 = vmatmul.bf16.gmra.mxu1 %v2696_v62  ;;  %v2469_v62 = vld [vmem:[%s3223_s4 + $0x108] sm:$0xff] }
 0x446   :  { %937 = vmatpush.bf16.msrb.mxu2 %v2469_v62 }
 0x455   :  { %858 = vmatmul.bf16.gmra.mxu1 %v2705_v0  ;;  %v2468_v0 = vld [vmem:[%s3223_s4 + $0x100] sm:$0xff] }
 0x456   :  { %938 = vmatpush.bf16.msrb.mxu2 %v2468_v0 }
 0x45a   :  { %1324 = vmatpush.bf16.msra.mxu2 %v2499_v41 }
 0x45e   :  { %1325 = vmatpush.bf16.msra.mxu2 %v2498_v45 }
 0x462   :  { %1326 = vmatpush.bf16.msra.mxu2 %v2497_v47 }
 0x465   :  { %863 = vmatmul.bf16.gmra.mxu1 %v2723_v5 }
 0x475   :  { %868 = vmatmul.bf16.gmra.mxu1 %v2738_v9 }
 0x482   :  { %v834_v54 = vpop.f32.mrf.mxu1 }
 0x485   :  { %1250 = vmatmul.bf16.vlgmr.msra.gmra.mxu1 %v1174_v15 }
 0x48a   :  { %v836_v55 = vpop.f32.mrf.mxu1 }
 0x48b   :  { %v874_v57 = vpack.c.bf16 %v836_v55, %v834_v54 }
 0x48d   :  { %939 = vmatmul.bf16.vlgmr.msrb.gmra.mxu2 %v874_v57 }
 0x492   :  { %v839_v8 = vpop.f32.mrf.mxu1 }
 0x49a   :  { %v841_v10 = vpop.f32.mrf.mxu1 }
 0x49b   :  { %v875_v12 = vpack.c.bf16 %v841_v10, %v839_v8 }
 0x49d   :  { %944 = vmatmul.bf16.gmra.mxu2 %v875_v12 }
 0x4a2   :  { %v844_v23 = vpop.f32.mrf.mxu1 }
 0x4aa   :  { %v846_v32 = vpop.f32.mrf.mxu1 }
 0x4ab   :  { %v876_v25 = vpack.c.bf16 %v846_v32, %v844_v23 }
 0x4ad   :  { %949 = vmatmul.bf16.gmra.mxu2 %v876_v25 }
 0x4b2   :  { %v849_v5 = vpop.f32.mrf.mxu1 }
 0x4ba   :  { %v851_v33 = vpop.f32.mrf.mxu1 }
 0x4bb   :  { %v877_v34 = vpack.c.bf16 %v851_v33, %v849_v5 }
 0x4bd   :  { %954 = vmatmul.bf16.gmra.mxu2 %v877_v34 }
 0x4c2   :  { %v854_v35 = vpop.f32.mrf.mxu1 }
 0x4ca   :  { %v856_v36 = vpop.f32.mrf.mxu1 }
 0x4cb   :  { %v878_v37 = vpack.c.bf16 %v856_v36, %v854_v35 }
 0x4cd   :  { %959 = vmatmul.bf16.gmra.mxu2 %v878_v37 }
 0x4d2   :  { %v859_v9 = vpop.f32.mrf.mxu1 }
 0x4da   :  { %v861_v38 = vpop.f32.mrf.mxu1 }
 0x4db   :  { %v879_v39 = vpack.c.bf16 %v861_v38, %v859_v9 }
 0x4dd   :  { %964 = vmatmul.bf16.gmra.mxu2 %v879_v39 }
 0x4e2   :  { %v864_v42 = vpop.f32.mrf.mxu1 }
 0x4ea   :  { %v866_v49 = vpop.f32.mrf.mxu1 }
 0x4eb   :  { %v880_v43 = vpack.c.bf16 %v866_v49, %v864_v42 }
 0x4ed   :  { %969 = vmatmul.bf16.gmra.mxu2 %v880_v43  ;;  %v2496_v43 = vld [vmem:[%s3223_s4 + $0x1e0] sm:$0xff] }
 0x4ee   :  { %1327 = vmatpush.bf16.msra.mxu2 %v2496_v43 }
 0x4f2   :  { %v869_v56 = vpop.f32.mrf.mxu1  ;;  %1328 = vmatpush.bf16.msra.mxu2 %v2495_v63 }
 0x4f6   :  { %1329 = vmatpush.bf16.msra.mxu2 %v2494_v2 }
 0x4fa   :  { %v871_v4 = vpop.f32.mrf.mxu1 }
 0x4fb   :  { %v881_v7 = vpack.c.bf16 %v871_v4, %v869_v56  ;;  %v2493_v4 = vld [vmem:[%s3223_s4 + $0x1c8] sm:$0xff] }
 0x4fc   :  { %1330 = vmatpush.bf16.msra.mxu2 %v2493_v4  ;;  %v2507_v4 = vld [vmem:[%s3223_s4 + $0x238] sm:$0xff] }
 0x4fd   :  { %974 = vmatmul.bf16.gmra.mxu2 %v881_v7  ;;  %1406 = vmatpush.bf16.msra.mxu3 %v2507_v4 }
 0x500   :  { %1331 = vmatpush.bf16.msra.mxu2 %v2492_v14 }
 0x502   :  { %v1251_v7 = vpop.f32.mrf.mxu1 }
 0x503   :  { %v1252_v11 = vadd.f32 %v2550_v6, %v1251_v7  ;;  %v2506_v6 = vld [vmem:[%s3223_s4 + $0x230] sm:$0xff] }
 0x504   :  { %1407 = vmatpush.bf16.msra.mxu3 %v2506_v6 }
 0x510   :  { %v940_v16 = vpop.f32.mrf.mxu2 }
 0x511   :  { %v941_v18 = vadd.f32 %v2938_v17, %v940_v16  ;;  %v1255_v16 = vmax.f32 %v1252_v11, 0.0  ;;  %v2505_v11 = vld [vmem:[%s3223_s4 + $0x228] sm:$0xff] }
 0x512   :  { %1408 = vmatpush.bf16.msra.mxu3 %v2505_v11  ;;  %v2521_v11 = vld [vmem:[%s3223_s4 + $0x2a8] sm:$0xff] }
 0x513   :  { %v980_v21 = vmax.f32 %v941_v18, 0.0 }
 0x518   :  { %v942_v19 = vpop.f32.mrf.mxu2 }
 0x519   :  { %v943_v20 = vadd.f32 %v2938_v17, %v942_v19  ;;  %v1273_v19 = vpack.c.bf16 %v1255_v16, %v1255_v16  ;;  %v2502_v16 = vld [vmem:[%s3223_s4 + $0x210] sm:$0xff] }
 0x51b   :  { %v981_v44 = vmax.f32 %v943_v20, 0.0  ;;  %1332 = vmatmul.bf16.vlgmr.msra.gmra.mxu2 %v1273_v19  ;;  %v2501_v19 = vld [vmem:[%s3223_s4 + $0x208] sm:$0xff] }
 0x51d   :  { %v996_v22 = vpack.c.bf16 %v981_v44, %v980_v21 }
 0x51f   :  { %1061 = vmatmul.bf16.vlgmr.msrb.gmra.mxu3 %v996_v22  ;;  %v1253_v22 = vpop.f32.mrf.mxu1 }
 0x520   :  { %v945_v24 = vpop.f32.mrf.mxu2  ;;  %v2500_v22 = vld [vmem:[%s3223_s4 + $0x200] sm:$0xff] }
 0x521   :  { %v946_v26 = vadd.f32 %v2938_v17, %v945_v24  ;;  %v2986_v24 = vld [vmem:[%s3224_s5 + $0x7] ss:$0 sm:$0xff] }
 0x523   :  { %v982_v29 = vmax.f32 %v946_v26, 0.0 }
 0x528   :  { %v947_v27 = vpop.f32.mrf.mxu2 }
 0x529   :  { %v948_v28 = vadd.f32 %v2938_v17, %v947_v27 }
 0x52b   :  { %v983_v30 = vmax.f32 %v948_v28, 0.0 }
 0x52d   :  { %v997_v31 = vpack.c.bf16 %v983_v30, %v982_v29 }
 0x52f   :  { %1066 = vmatmul.bf16.gmra.mxu3 %v997_v31 }
 0x530   :  { %v950_v48 = vpop.f32.mrf.mxu2 }
 0x531   :  { %v951_v52 = vadd.f32 %v2938_v17, %v950_v48  ;;  %v2999_v48 = vld [vmem:[%s3224_s5 + $0x9] ss:$0 sm:$0xff] }
 0x533   :  { %v984_v60 = vmax.f32 %v951_v52, 0.0 }
 0x538   :  { %v952_v58 = vpop.f32.mrf.mxu2 }
 0x539   :  { %v953_v59 = vadd.f32 %v2938_v17, %v952_v58 }
 0x53b   :  { %v985_v61 = vmax.f32 %v953_v59, 0.0 }
 0x53d   :  { %v998_v62 = vpack.c.bf16 %v985_v61, %v984_v60 }
 0x53f   :  { %1071 = vmatmul.bf16.gmra.mxu3 %v998_v62 }
 0x540   :  { %v955_v0 = vpop.f32.mrf.mxu2 }
 0x541   :  { %v956_v54 = vadd.f32 %v2938_v17, %v955_v0 }
 0x543   :  { %v986_v8 = vmax.f32 %v956_v54, 0.0 }
 0x548   :  { %v957_v55 = vpop.f32.mrf.mxu2 }
 0x549   :  { %v958_v57 = vadd.f32 %v2938_v17, %v957_v55 }
 0x54b   :  { %v987_v10 = vmax.f32 %v958_v57, 0.0 }
 0x54d   :  { %v999_v12 = vpack.c.bf16 %v987_v10, %v986_v8 }
 0x54f   :  { %1076 = vmatmul.bf16.gmra.mxu3 %v999_v12 }
 0x550   :  { %v960_v23 = vpop.f32.mrf.mxu2 }
 0x551   :  { %v961_v32 = vadd.f32 %v2938_v17, %v960_v23 }
 0x553   :  { %v988_v33 = vmax.f32 %v961_v32, 0.0 }
 0x558   :  { %v962_v25 = vpop.f32.mrf.mxu2 }
 0x559   :  { %v963_v5 = vadd.f32 %v2938_v17, %v962_v25 }
 0x55b   :  { %v989_v34 = vmax.f32 %v963_v5, 0.0 }
 0x55d   :  { %v1000_v35 = vpack.c.bf16 %v989_v34, %v988_v33 }
 0x55f   :  { %1081 = vmatmul.bf16.gmra.mxu3 %v1000_v35 }
 0x560   :  { %v965_v36 = vpop.f32.mrf.mxu2 }
 0x561   :  { %v966_v37 = vadd.f32 %v2938_v17, %v965_v36 }
 0x563   :  { %v990_v39 = vmax.f32 %v966_v37, 0.0 }
 0x568   :  { %v967_v9 = vpop.f32.mrf.mxu2 }
 0x569   :  { %v968_v38 = vadd.f32 %v2938_v17, %v967_v9 }
 0x56b   :  { %v991_v40 = vmax.f32 %v968_v38, 0.0 }
 0x56d   :  { %v1001_v42 = vpack.c.bf16 %v991_v40, %v990_v39 }
 0x56f   :  { %1086 = vmatmul.bf16.gmra.mxu3 %v1001_v42 }
 0x570   :  { %v970_v46 = vpop.f32.mrf.mxu2 }
 0x571   :  { %v971_v49 = vadd.f32 %v2938_v17, %v970_v46 }
 0x573   :  { %v992_v53 = vmax.f32 %v971_v49, 0.0 }
 0x578   :  { %v972_v50 = vpop.f32.mrf.mxu2 }
 0x579   :  { %v973_v51 = vadd.f32 %v2938_v17, %v972_v50 }
 0x57b   :  { %v993_v56 = vmax.f32 %v973_v51, 0.0 }
 0x57d   :  { %v1002_v1 = vpack.c.bf16 %v993_v56, %v992_v53 }
 0x57f   :  { %1091 = vmatmul.bf16.gmra.mxu3 %v1002_v1 }
 0x580   :  { %v975_v3 = vpop.f32.mrf.mxu2 }
 0x581   :  { %v976_v13 = vadd.f32 %v2938_v17, %v975_v3 }
 0x583   :  { %v994_v20 = vmax.f32 %v976_v13, 0.0  ;;  %v2504_v13 = vld [vmem:[%s3223_s4 + $0x220] sm:$0xff] }
 0x584   :  { %1409 = vmatpush.bf16.msra.mxu3 %v2504_v13 }
 0x588   :  { %v977_v15 = vpop.f32.mrf.mxu2 }
 0x589   :  { %v978_v18 = vadd.f32 %v2938_v17, %v977_v15  ;;  %v2992_v17 = vld [vmem:[%s3224_s5 + $0x8] ss:$0 sm:$0xff]  ;;  %v2503_v15 = vld [vmem:[%s3223_s4 + $0x218] sm:$0xff] }
 0x58a   :  { %1410 = vmatpush.bf16.msra.mxu3 %v2503_v15 }
 0x58b   :  { %v995_v21 = vmax.f32 %v978_v18, 0.0 }
 0x58d   :  { %v1003_v44 = vpack.c.bf16 %v995_v21, %v994_v20  ;;  %v2551_v20 = vld [vmem:[%s3224_s5 + $0xb] ss:$0 sm:$0xff] }
 0x58e   :  { %1411 = vmatpush.bf16.msra.mxu3 %v2502_v16  ;;  %v2520_v16 = vld [vmem:[%s3223_s4 + $0x2a0] sm:$0xff] }
 0x58f   :  { %1096 = vmatmul.bf16.gmra.mxu3 %v1003_v44 }
 0x592   :  { %1412 = vmatpush.bf16.msra.mxu3 %v2501_v19  ;;  %v2517_v19 = vld [vmem:[%s3223_s4 + $0x288] sm:$0xff] }
 0x596   :  { %1413 = vmatpush.bf16.msra.mxu3 %v2500_v22  ;;  %v2531_v22 = vld [vmem:[%s3223_s4 + $0x2f8] sm:$0xff] }
 0x597   :  { %1648 = vmatpush.bf16.msrb.mxu2 %v2531_v22 }
 0x59e   :  { %v1333_v21 = vpop.f32.mrf.mxu2 }
 0x59f   :  { %v1334_v44 = vadd.f32 %v2551_v20, %v1333_v21  ;;  %v2508_v21 = vld [vmem:[%s3223_s4 + $0x240] sm:$0xff] }
 0x5a2   :  { %v1062_v26 = vpop.f32.mrf.mxu3 }
 0x5a3   :  { %v1063_v27 = vadd.f32 %v2986_v24, %v1062_v26 }
 0x5a5   :  { %v1102_v28 = vmax.f32 %v1063_v27, 0.0  ;;  %v1337_v27 = vmax.f32 %v1334_v44, 0.0 }
 0x5a7   :  { %v1119_v31 = vmul.f32 %v2992_v17, %v1102_v28  ;;  %v1355_v28 = vpack.c.bf16 %v1337_v27, %v1337_v27  ;;  %v2529_v27 = vld [vmem:[%s3223_s4 + $0x2e8] sm:$0xff] }
 0x5a9   :  { %v3003_v59 = vadd.f32 %v2999_v48, %v1119_v31  ;;  %1414 = vmatmul.bf16.vlgmr.msra.gmra.mxu3 %v1355_v28  ;;  %v1335_v31 = vpop.f32.mrf.mxu2  ;;  %v2528_v28 = vld [vmem:[%s3223_s4 + $0x2e0] sm:$0xff] }
 0x5aa   :  { %v1064_v29 = vpop.f32.mrf.mxu3 }
 0x5ab   :  { %v1065_v30 = vadd.f32 %v2986_v24, %v1064_v29 }
 0x5ad   :  { %v1103_v52 = vmax.f32 %v1065_v30, 0.0 }
 0x5af   :  { %v1120_v58 = vmul.f32 %v2992_v17, %v1103_v52 }
 0x5b1   :  { %v3006_v60 = vadd.f32 %v2999_v48, %v1120_v58 }
 0x5b2   :  { %v1067_v61 = vpop.f32.mrf.mxu3 }
 0x5b3   :  { %v1153_v62 = vpack.c.bf16 %v3006_v60, %v3003_v59  ;;  %v1068_v0 = vadd.f32 %v2986_v24, %v1067_v61  ;;  %v2512_v59 = vld [vmem:[%s3223_s4 + $0x260] sm:$0xff]  ;;  %v2511_v60 = vld [vmem:[%s3223_s4 + $0x258] sm:$0xff] }
 0x5b5   :  { %v1104_v54 = vmax.f32 %v1068_v0, 0.0 }
 0x5b7   :  { %v1121_v8 = vmul.f32 %v2992_v17, %v1104_v54 }
 0x5b9   :  { %v3015_v23 = vadd.f32 %v2999_v48, %v1121_v8 }
 0x5ba   :  { %v1069_v55 = vpop.f32.mrf.mxu3 }
 0x5bb   :  { %v1070_v57 = vadd.f32 %v2986_v24, %v1069_v55 }
 0x5bd   :  { %v1105_v10 = vmax.f32 %v1070_v57, 0.0 }
 0x5bf   :  { %v1122_v12 = vmul.f32 %v2992_v17, %v1105_v10 }
 0x5c1   :  { %v3018_v32 = vadd.f32 %v2999_v48, %v1122_v12 }
 0x5c2   :  { %v1072_v25 = vpop.f32.mrf.mxu3 }
 0x5c3   :  { %v1154_v5 = vpack.c.bf16 %v3018_v32, %v3015_v23  ;;  %v1073_v33 = vadd.f32 %v2986_v24, %v1072_v25  ;;  %v2513_v23 = vld [vmem:[%s3223_s4 + $0x268] sm:$0xff] }
 0x5c4   :  { %v2509_v32 = vld [vmem:[%s3223_s4 + $0x248] sm:$0xff] }
 0x5c5   :  { %v1106_v34 = vmax.f32 %v1073_v33, 0.0 }
 0x5c7   :  { %v1123_v37 = vmul.f32 %v2992_v17, %v1106_v34 }
 0x5c9   :  { %v3027_v39 = vadd.f32 %v2999_v48, %v1123_v37 }
 0x5ca   :  { %v1074_v35 = vpop.f32.mrf.mxu3 }
 0x5cb   :  { %v1075_v36 = vadd.f32 %v2986_v24, %v1074_v35 }
 0x5cd   :  { %v1107_v9 = vmax.f32 %v1075_v36, 0.0 }
 0x5cf   :  { %v1124_v38 = vmul.f32 %v2992_v17, %v1107_v9 }
 0x5d1   :  { %v3030_v40 = vadd.f32 %v2999_v48, %v1124_v38 }
 0x5d2   :  { %v1077_v41 = vpop.f32.mrf.mxu3 }
 0x5d3   :  { %v1155_v42 = vpack.c.bf16 %v3030_v40, %v3027_v39  ;;  %v1078_v45 = vadd.f32 %v2986_v24, %v1077_v41  ;;  %v1152_v39 = vld [vmem:[%s3228_s2] sm:$0xf]  ;;  %v2514_v40 = vld [vmem:[%s3223_s4 + $0x270] sm:$0xff] }
 0x5d5   :  { %v1108_v46 = vmax.f32 %v1078_v45, 0.0 }
 0x5d7   :  { %v1125_v43 = vmul.f32 %v2992_v17, %v1108_v46 }
 0x5d9   :  { %v3039_v53 = vadd.f32 %v2999_v48, %v1125_v43  ;;  %v2523_v43 = vld [vmem:[%s3223_s4 + $0x2b8] sm:$0xff] }
 0x5da   :  { %v1079_v47 = vpop.f32.mrf.mxu3  ;;  %1566 = vmatpush.bf16.msrb.mxu1 %v2523_v43 }
 0x5db   :  { %v1080_v49 = vadd.f32 %v2986_v24, %v1079_v47 }
 0x5dd   :  { %v1109_v50 = vmax.f32 %v1080_v49, 0.0 }
 0x5df   :  { %v1126_v51 = vmul.f32 %v2992_v17, %v1109_v50 }
 0x5e1   :  { %v3042_v56 = vadd.f32 %v2999_v48, %v1126_v51 }
 0x5e2   :  { %v1082_v63 = vpop.f32.mrf.mxu3 }
 0x5e3   :  { %v1156_v1 = vpack.c.bf16 %v3042_v56, %v3039_v53  ;;  %v1083_v36 = vadd.f32 %v2986_v24, %v1082_v63  ;;  %v2522_v63 = vld [vmem:[%s3223_s4 + $0x2b0] sm:$0xff]  ;;  %v2515_v53 = vld [vmem:[%s3223_s4 + $0x278] sm:$0xff]  ;;  %v2516_v56 = vld [vmem:[%s3223_s4 + $0x280] sm:$0xff] }
 0x5e4   :  { %1567 = vmatpush.bf16.msrb.mxu1 %v2522_v63  ;;  %v2555_v63 = vld [vmem:[%s3224_s5 + $0xf] ss:$0 sm:$0xff] }
 0x5e5   :  { %v1110_v50 = vmax.f32 %v1083_v36, 0.0 }
 0x5e7   :  { %v1127_v6 = vmul.f32 %v2992_v17, %v1110_v50 }
 0x5e8   :  { %1568 = vmatpush.bf16.msrb.mxu1 %v2521_v11 }
 0x5e9   :  { %v1144_v15 = vadd.f32 %v2999_v48, %v1127_v6 }
 0x5ea   :  { %v1084_v2 = vpop.f32.mrf.mxu3 }
 0x5eb   :  { %v1085_v25 = vadd.f32 %v2986_v24, %v1084_v2 }
 0x5ec   :  { %1569 = vmatpush.bf16.msrb.mxu1 %v2520_v16 }
 0x5ed   :  { %v1111_v45 = vmax.f32 %v1085_v25, 0.0  ;;  %v2535_v25 = vld [vmem:[%s3223_s4 + $0x318] sm:$0xff] }
 0x5ef   :  { %v1128_v2 = vmul.f32 %v2992_v17, %v1111_v45  ;;  %v2533_v45 = vld [vmem:[%s3223_s4 + $0x308] sm:$0xff] }
 0x5f1   :  { %v1145_v13 = vadd.f32 %v2999_v48, %v1128_v2 }
 0x5f2   :  { %v1087_v3 = vpop.f32.mrf.mxu3 }
 0x5f3   :  { %v1088_v57 = vadd.f32 %v2986_v24, %v1087_v3 }
 0x5f5   :  { %v1112_v37 = vmax.f32 %v1088_v57, 0.0  ;;  %v2539_v57 = vld [vmem:[%s3223_s4 + $0x338] sm:$0xff] }
 0x5f6   :  { %1730 = vmatpush.bf16.msrb.mxu3 %v2539_v57 }
 0x5fa   :  { %v1089_v7 = vpop.f32.mrf.mxu3 }
 0x5fb   :  { %v1090_v0 = vadd.f32 %v2986_v24, %v1089_v7 }
 0x5fd   :  { %v1113_v33 = vmax.f32 %v1090_v0, 0.0  ;;  %v2525_v0 = vld [vmem:[%s3223_s4 + $0x2c8] sm:$0xff] }
 0x5ff   :  { %v1130_v46 = vmul.f32 %v2992_v17, %v1113_v33  ;;  %v2534_v33 = vld [vmem:[%s3223_s4 + $0x310] sm:$0xff] }
 0x601   :  { %v1147_v3 = vadd.f32 %v2999_v48, %v1130_v46  ;;  %v2532_v46 = vld [vmem:[%s3223_s4 + $0x300] sm:$0xff] }
 0x602   :  { %v1092_v14 = vpop.f32.mrf.mxu3 }
 0x603   :  { %v1093_v52 = vadd.f32 %v2986_v24, %v1092_v14 }
 0x605   :  { %v1114_v8 = vmax.f32 %v1093_v52, 0.0 }
 0x607   :  { %v1131_v9 = vmul.f32 %v2992_v17, %v1114_v8  ;;  %v2538_v8 = vld [vmem:[%s3223_s4 + $0x330] sm:$0xff] }
 0x608   :  { %1731 = vmatpush.bf16.msrb.mxu3 %v2538_v8 }
 0x609   :  { %v1148_v51 = vadd.f32 %v2999_v48, %v1131_v9 }
 0x60a   :  { %v1094_v18 = vpop.f32.mrf.mxu3 }
 0x60b   :  { %v1095_v30 = vadd.f32 %v2986_v24, %v1094_v18  ;;  %v2519_v18 = vld [vmem:[%s3223_s4 + $0x298] sm:$0xff] }
 0x60c   :  { %1570 = vmatpush.bf16.msrb.mxu1 %v2519_v18 }
 0x60d   :  { %v1115_v54 = vmax.f32 %v1095_v30, 0.0  ;;  %v2526_v30 = vld [vmem:[%s3223_s4 + $0x2d0] sm:$0xff] }
 0x60f   :  { %v1132_v34 = vmul.f32 %v2992_v17, %v1115_v54 }
 0x611   :  { %v1149_v47 = vadd.f32 %v2999_v48, %v1132_v34  ;;  %v2553_v34 = vld [vmem:[%s3224_s5 + $0xd] ss:$0 sm:$0xff] }
 0x612   :  { %v1097_v26 = vpop.f32.mrf.mxu3 }
 0x613   :  { %v1098_v29 = vadd.f32 %v2986_v24, %v1097_v26  ;;  %v1159_v4 = vpack.c.bf16 %v1149_v47, %v1148_v51  ;;  %v2530_v26 = vld [vmem:[%s3223_s4 + $0x2f0] sm:$0xff]  ;;  %v2554_v47 = vld [vmem:[%s3224_s5 + $0xe] ss:$0 sm:$0xff] }
 0x614   :  { %1649 = vmatpush.bf16.msrb.mxu2 %v2530_v26 }
 0x615   :  { %v1116_v58 = vmax.f32 %v1098_v29, 0.0  ;;  %v2527_v29 = vld [vmem:[%s3223_s4 + $0x2d8] sm:$0xff] }
 0x617   :  { %v1133_v10 = vmul.f32 %v2992_v17, %v1116_v58 }
 0x618   :  { %1650 = vmatpush.bf16.msrb.mxu2 %v2529_v27 }
 0x619   :  { %v1150_v38 = vadd.f32 %v2999_v48, %v1133_v10  ;;  %v2537_v10 = vld [vmem:[%s3223_s4 + $0x328] sm:$0xff] }
 0x61a   :  { %v1099_v61 = vpop.f32.mrf.mxu3  ;;  %1732 = vmatpush.bf16.msrb.mxu3 %v2537_v10 }
 0x61b   :  { %v1100_v55 = vadd.f32 %v2986_v24, %v1099_v61  ;;  %v1129_v24 = vmul.f32 %v2992_v17, %v1112_v37 }
 0x61c   :  { %1651 = vmatpush.bf16.msrb.mxu2 %v2528_v28 }
 0x61d   :  { %v1117_v12 = vmax.f32 %v1100_v55, 0.0  ;;  %v1146_v7 = vadd.f32 %v2999_v48, %v1129_v24  ;;  %v2524_v55 = vld [vmem:[%s3223_s4 + $0x2c0] sm:$0xff] }
 0x61f   :  { %v1134_v35 = vmul.f32 %v2992_v17, %v1117_v12  ;;  %v1158_v14 = vpack.c.bf16 %v1147_v3, %v1146_v7  ;;  %v1157_v17 = vpack.c.bf16 %v1145_v13, %v1144_v15  ;;  %v2536_v12 = vld [vmem:[%s3223_s4 + $0x320] sm:$0xff] }
 0x620   :  { %1652 = vmatpush.bf16.msrb.mxu2 %v2527_v29  ;;  %1733 = vmatpush.bf16.msrb.mxu3 %v2536_v12 }
 0x621   :  { %v1151_v41 = vadd.f32 %v2999_v48, %v1134_v35  ;;  %v2518_v48 = vld [vmem:[%s3223_s4 + $0x290] sm:$0xff] }
 0x622   :  { %1571 = vmatpush.bf16.msrb.mxu1 %v2518_v48 }
 0x623   :  { %v1160_v49 = vpack.c.bf16 %v1151_v41, %v1150_v38 }
 0x624   :  { %1653 = vmatpush.bf16.msrb.mxu2 %v2526_v30  ;;  %1734 = vmatpush.bf16.msrb.mxu3 %v2535_v25 }
 0x625   :  { %1161 = vmatpush.bf16.msra.mxu0 %v1160_v49 }
 0x626   :  { %1572 = vmatpush.bf16.msrb.mxu1 %v2517_v19 }
 0x628   :  { %1654 = vmatpush.bf16.msrb.mxu2 %v2525_v0  ;;  %1735 = vmatpush.bf16.msrb.mxu3 %v2534_v33 }
 0x629   :  { %1162 = vmatpush.bf16.msra.mxu0 %v1159_v4 }
 0x62a   :  { %1573 = vmatpush.bf16.msrb.mxu1 %v2516_v56 }
 0x62c   :  { %1655 = vmatpush.bf16.msrb.mxu2 %v2524_v55  ;;  %1736 = vmatpush.bf16.msrb.mxu3 %v2533_v45 }
 0x62d   :  { %1163 = vmatpush.bf16.msra.mxu0 %v1158_v14 }
 0x630   :  { %1737 = vmatpush.bf16.msrb.mxu3 %v2532_v46 }
 0x631   :  { %1164 = vmatpush.bf16.msra.mxu0 %v1157_v17 }
 0x635   :  { %1165 = vmatpush.bf16.msra.mxu0 %v1156_v1 }
 0x639   :  { %1166 = vmatpush.bf16.msra.mxu0 %v1155_v42  ;;  %v1415_v42 = vpop.f32.mrf.mxu3 }
 0x63d   :  { %1167 = vmatpush.bf16.msra.mxu0 %v1154_v5  ;;  %v2552_v5 = vld [vmem:[%s3224_s5 + $0xc] ss:$0 sm:$0xff] }
 0x63e   :  { %v1416_v1 = vadd.f32 %v2552_v5, %v1415_v42 }
 0x640   :  { %v1420_v20 = vpack.c.bf16 %v1416_v1, %v1416_v1 }
 0x641   :  { %1168 = vmatpush.bf16.msra.mxu0 %v1153_v62  ;;  %v2510_v62 = vld [vmem:[%s3223_s4 + $0x250] sm:$0xff]  ;;  %v1417_v44 = vpop.f32.mrf.mxu3 }
 0x642   :  { %1574 = vmatmul.bf16.vlgmr.msrb.gmra.mxu1 %v1420_v20 }
 0x644   :  { %1169 = vmatmul.bf16.vlgmr.msra.gmra.mxu0 %v1152_v39 }
 0x645   :  { %1553 = vmatpush.bf16.msrb.mxu0 %v2515_v53 }
 0x649   :  { %1554 = vmatpush.bf16.msrb.mxu0 %v2514_v40 }
 0x64d   :  { %1555 = vmatpush.bf16.msrb.mxu0 %v2513_v23 }
 0x651   :  { %1556 = vmatpush.bf16.msrb.mxu0 %v2512_v59 }
 0x655   :  { %1557 = vmatpush.bf16.msrb.mxu0 %v2511_v60 }
 0x659   :  { %1558 = vmatpush.bf16.msrb.mxu0 %v2510_v62 }
 0x65d   :  { %1559 = vmatpush.bf16.msrb.mxu0 %v2509_v32 }
 0x661   :  { %1560 = vmatpush.bf16.msrb.mxu0 %v2508_v21 }
 0x6bf   :  { %v1575_v61 = vpop.f32.mrf.mxu1 }
 0x6c1   :  { %v1170_v31 = vpop.f32.mrf.mxu0 }
 0x6c2   :  { %v1419_v52 = vpack.c.bf16 %v1170_v31, %v1170_v31 }
 0x6c4   :  { %1561 = vmatmul.bf16.vlgmr.msrb.gmra.mxu0 %v1419_v52 }
 0x6c7   :  { %v1577_v54 = vpop.f32.mrf.mxu1 }
 0x6c9   :  { %v1172_v58 = vpop.f32.mrf.mxu0 }
 0x741   :  { %v1562_v35 = vpop.f32.mrf.mxu0 }
 0x742   :  { %v1563_v36 = vadd.f32 %v2553_v34, %v1562_v35 }
 0x744   :  { %v1576_v37 = vadd.f32 %v1575_v61, %v1563_v36 }
 0x746   :  { %v1579_v9 = vmax.f32 %v1576_v37, 0.0 }
 0x748   :  { %v1597_v38 = vpack.c.bf16 %v1579_v9, %v1579_v9 }
 0x749   :  { %v1564_v41 = vpop.f32.mrf.mxu0 }
 0x74a   :  { %1656 = vmatmul.bf16.vlgmr.msrb.gmra.mxu2 %v1597_v38 }
 0x7cd   :  { %v1657_v49 = vpop.f32.mrf.mxu2 }
 0x7ce   :  { %v1658_v43 = vadd.f32 %v2554_v47, %v1657_v49 }
 0x7d0   :  { %v1661_v50 = vmax.f32 %v1658_v43, 0.0 }
 0x7d2   :  { %v1679_v24 = vpack.c.bf16 %v1661_v50, %v1661_v50 }
 0x7d4   :  { %1738 = vmatmul.bf16.vlgmr.msrb.gmra.mxu3 %v1679_v24 }
 0x7d5   :  { %v1659_v51 = vpop.f32.mrf.mxu2 }
 0x857   :  { %v1739_v2 = vpop.f32.mrf.mxu3 }
 0x858   :  { %v1740_v3 = vadd.f32 %v2555_v63, %v1739_v2 }
 0x85a   :  { %1743 = vst [vmem:[%s3229_s6] sm:$0xff] %v1740_v3 }
 0x85f   :  { %v1741_v4 = vpop.f32.mrf.mxu3 }

</bundles_post_ra>
